<compile_context>
chip_gen: v7x
topology: tpu7x:2x2x1
jax: 0.10.0
libtpu: 0.0.40
codegen_flags: <defaults>
</compile_context>

<pallas_src>
import jax
import jax.numpy as jnp
from jax import lax
from jax.experimental import pallas as pl
from jax.experimental.pallas import tpu as pltpu


def mask_head_kernel(x_ref, w1_ref, b1_ref, w2_ref, b2_ref, out_ref):
    """Blocks:
       x_ref   : (1, H, W, Cin)   input dtype (f32)
       w1_ref  : (9, Cin, Cmid)   bf16 taps of the 3x3 conv
       b1_ref  : (1, Cmid)        f32
       w2_ref  : (Cmid, Cout)     bf16 1x1 conv weight
       b2_ref  : (1, Cout)        f32
       out_ref : (1, H, W, Cout)
    """
    x = x_ref[0]                                   # (H, W, Cin), f32
    H, W, Cin = x.shape
    Cmid = w1_ref.shape[-1]
    Cout = w2_ref.shape[-1]

    # Zero-pad the spatial borders once (padding=1 of the 3x3 conv).
    zrow = jnp.zeros((1, W, Cin), x.dtype)
    xp = jnp.concatenate([zrow, x, zrow], axis=0)          # (H+2, W,   Cin)
    zcol = jnp.zeros((H + 2, 1, Cin), x.dtype)
    xp = jnp.concatenate([zcol, xp, zcol], axis=1)         # (H+2, W+2, Cin)

    # conv3x3 = 9 shifted-window matmuls, accumulated back-to-back in f32.
    acc = jnp.zeros((H * W, Cmid), jnp.float32)
    for kh in range(3):                                    # static unroll
        for kw in range(3):
            win = xp[kh:kh + H, kw:kw + W, :]              # static slice (H, W, Cin)
            lhs = win.reshape(H * W, Cin).astype(jnp.bfloat16)
            acc += jnp.dot(lhs, w1_ref[kh * 3 + kw],
                           preferred_element_type=jnp.float32)

    # bias + ReLU in f32.
    mid = jnp.maximum(acc + b1_ref[...].astype(jnp.float32), 0.0)

    # conv1x1 = plain channel matmul.
    out = jnp.dot(mid.astype(jnp.bfloat16), w2_ref[...],
                  preferred_element_type=jnp.float32)
    out = out + b2_ref[...].astype(jnp.float32)

    out_ref[0] = out.reshape(H, W, Cout).astype(out_ref.dtype)


def mask_head(x, w1_taps, b1, w2, b2):
    """x: (B, H, W, Cin) f32, NHWC.
       w1_taps: (9, Cin, Cmid) bf16, b1: (Cmid,) f32,
       w2: (Cmid, Cout) bf16,  b2: (Cout,) f32.
       Returns (B, H, W, Cout) f32."""
    B, H, W, Cin = x.shape
    Cmid = w1_taps.shape[-1]
    Cout = w2.shape[-1]

    img_in_spec = pl.BlockSpec((1, H, W, Cin), lambda b: (b, 0, 0, 0))
    img_out_spec = pl.BlockSpec((1, H, W, Cout), lambda b: (b, 0, 0, 0))
    w1_spec = pl.BlockSpec((9, Cin, Cmid), lambda b: (0, 0, 0))
    b1_spec = pl.BlockSpec((1, Cmid), lambda b: (0, 0))
    w2_spec = pl.BlockSpec((Cmid, Cout), lambda b: (0, 0))
    b2_spec = pl.BlockSpec((1, Cout), lambda b: (0, 0))

    # TODO(synk): for images too large for the VMEM budget, add an H-tile grid
    # axis with haloed (H_tile + 2) row loads instead of whole-image blocks.
    return pl.pallas_call(
        mask_head_kernel,
        out_shape=jax.ShapeDtypeStruct((B, H, W, Cout), x.dtype),
        grid_spec=pltpu.PrefetchScalarGridSpec(
            num_scalar_prefetch=0,
            grid=(B,),
            in_specs=[img_in_spec, w1_spec, b1_spec, w2_spec, b2_spec],
            out_specs=img_out_spec,
        ),
        compiler_params=pltpu.CompilerParams(
            dimension_semantics=("parallel",),
            vmem_limit_bytes=48 * 1024 * 1024,
        ),
    )(x, w1_taps, b1.reshape(1, -1), w2, b2.reshape(1, -1))


# -------------------- weight conversion (PyTorch OIHW -> kernel form) --------

def conv3x3_oihw_to_taps(w_oihw):
    """(Cout, Cin, 3, 3) -> (9, Cin, Cout) tap matrices, tap index = kh*3 + kw."""
    co, ci, kh, kw = w_oihw.shape
    return jnp.transpose(w_oihw, (2, 3, 1, 0)).reshape(kh * kw, ci, co)


def conv1x1_oihw_to_mat(w_oihw):
    """(Cout, Cin, 1, 1) -> (Cin, Cout)."""
    return jnp.transpose(w_oihw[:, :, 0, 0], (1, 0))


# -------------------- pure-JAX reference (correctness check) -----------------

def _mask_head_ref(x, w1_oihw, b1, w2_oihw, b2):
    w1_hwio = jnp.transpose(w1_oihw, (2, 3, 1, 0))
    mid = lax.conv_general_dilated(
        x, w1_hwio, window_strides=(1, 1), padding=((1, 1), (1, 1)),
        dimension_numbers=("NHWC", "HWIO", "NHWC"),
        precision=lax.Precision.HIGHEST) + b1
    mid = jnp.maximum(mid, 0.0)
    # Mirror the kernel's bf16 quantization of the mid-activation matmul operand.
    mid = mid.astype(jnp.bfloat16).astype(jnp.float32)
    w2 = jnp.transpose(w2_oihw[:, :, 0, 0], (1, 0))
    out = jnp.einsum("bhwc,co->bhwo", mid, w2,
                     precision=lax.Precision.HIGHEST) + b2
    return out


# -----------------------------------------------------------------------------

if __name__ == "__main__":
    in_channels, mid_channels, out_channels = 64, 128, 128
    B, H, W = 2, 16, 16

    key = jax.random.PRNGKey(0)
    k1, k2, k3, k4, k5 = jax.random.split(key, 5)

    # PyTorch-shaped parameters (OIHW + bias).
    w1_oihw = 0.1 * jax.random.normal(k1, (mid_channels, in_channels, 3, 3), jnp.float32)
    b1 = 0.1 * jax.random.normal(k2, (mid_channels,), jnp.float32)
    w2_oihw = 0.1 * jax.random.normal(k3, (out_channels, mid_channels, 1, 1), jnp.float32)
    b2 = 0.1 * jax.random.normal(k4, (out_channels,), jnp.float32)

    # Input, NHWC.
    x = jax.random.normal(k5, (B, H, W, in_channels), jnp.float32)

    # bf16-quantize inputs/weights once so the kernel (bf16 MXU operands) and
    # the f32 reference see identical operand values.
    q = lambda a: a.astype(jnp.bfloat16).astype(jnp.float32)
    x_q, w1_q, w2_q = q(x), q(w1_oihw), q(w2_oihw)

    w1_taps = conv3x3_oihw_to_taps(w1_q).astype(jnp.bfloat16)   # (9, Cin, Cmid)
    w2_mat = conv1x1_oihw_to_mat(w2_q).astype(jnp.bfloat16)     # (Cmid, Cout)

    out = jax.block_until_ready(jax.jit(mask_head)(x_q, w1_taps, b1, w2_mat, b2))
    ref = jax.block_until_ready(_mask_head_ref(x_q, w1_q, b1, w2_q, b2))

    assert out.shape == (B, H, W, out_channels)
    max_err = float(jnp.max(jnp.abs(out - ref)))
    assert jnp.allclose(out, ref, atol=1e-2, rtol=1e-2), max_err

    print("KERNEL_OK")
</pallas_src>

<mosaic_0001>
module attributes {stable_mosaic.version = 11 : i64} {
  func.func @mask_head_kernel(%arg0: i32, %arg1: memref<1x16x16x64xf32, #tpu.memory_space<vmem>>, %arg2: memref<9x64x128xbf16, #tpu.memory_space<vmem>>, %arg3: memref<1x128xf32, #tpu.memory_space<vmem>>, %arg4: memref<128x128xbf16, #tpu.memory_space<vmem>>, %arg5: memref<1x128xf32, #tpu.memory_space<vmem>>, %arg6: memref<1x16x16x128xf32, #tpu.memory_space<vmem>>) attributes {dimension_semantics = [#tpu.dimension_semantics<parallel>], iteration_bounds = array<i64: 2>, scalar_prefetch = 0 : i64, scratch_operands = 0 : i64, tpu.core_type = #tpu.core_type<tc>, window_params = [{transform_indices = @transform_0, window_bounds = array<i64: 1, 16, 16, 64>}, {pipeline_mode = #tpu.pipeline_mode<synchronous>, transform_indices = @transform_1, window_bounds = array<i64: 9, 64, 128>}, {pipeline_mode = #tpu.pipeline_mode<synchronous>, transform_indices = @transform_2, window_bounds = array<i64: 1, 128>}, {pipeline_mode = #tpu.pipeline_mode<synchronous>, transform_indices = @transform_3, window_bounds = array<i64: 128, 128>}, {pipeline_mode = #tpu.pipeline_mode<synchronous>, transform_indices = @transform_4, window_bounds = array<i64: 1, 128>}, {transform_indices = @transform_5, window_bounds = array<i64: 1, 16, 16, 128>}]} {
    %c0 = arith.constant 0 : index
    %c0_0 = arith.constant 0 : index
    %c0_1 = arith.constant 0 : index
    %c0_2 = arith.constant 0 : index
    %0 = vector.load %arg1[%c0, %c0_0, %c0_1, %c0_2] : memref<1x16x16x64xf32, #tpu.memory_space<vmem>>, vector<1x16x16x64xf32>
    %1 = vector.shape_cast %0 : vector<1x16x16x64xf32> to vector<16x16x64xf32>
    %cst = arith.constant 0.000000e+00 : f32
    %2 = vector.broadcast %cst : f32 to vector<1x16x64xf32>
    %3 = tpu.concatenate %2, %1, %2 in 0 : vector<1x16x64xf32>, vector<16x16x64xf32>, vector<1x16x64xf32> -> vector<18x16x64xf32>
    %cst_3 = arith.constant 0.000000e+00 : f32
    %4 = vector.broadcast %cst_3 : f32 to vector<18x1x64xf32>
    %5 = tpu.concatenate %4, %3, %4 in 1 : vector<18x1x64xf32>, vector<18x16x64xf32>, vector<18x1x64xf32> -> vector<18x18x64xf32>
    %cst_4 = arith.constant 0.000000e+00 : f32
    %6 = vector.broadcast %cst_4 : f32 to vector<256x128xf32>
    %7 = vector.extract_strided_slice %5 {offsets = [0, 0, 0], sizes = [16, 16, 64], strides = [1, 1, 1]} : vector<18x18x64xf32> to vector<16x16x64xf32>
    %8 = vector.shape_cast %7 : vector<16x16x64xf32> to vector<256x64xf32>
    %9 = arith.truncf %8 : vector<256x64xf32> to vector<256x64xbf16>
    %c0_5 = arith.constant 0 : index
    %c0_6 = arith.constant 0 : index
    %c0_7 = arith.constant 0 : index
    %10 = vector.load %arg2[%c0_5, %c0_6, %c0_7] : memref<9x64x128xbf16, #tpu.memory_space<vmem>>, vector<1x64x128xbf16>
    %11 = vector.shape_cast %10 : vector<1x64x128xbf16> to vector<64x128xbf16>
    %cst_8 = arith.constant dense<0.000000e+00> : vector<256x128xf32>
    %12 = tpu.matmul %9, %11, %cst_8 {dimension_numbers = #tpu.dot_dimension_numbers<[1], [0], [0], [1], [0, 0, 1, 1], [], []>} : vector<256x64xbf16>, vector<64x128xbf16>, vector<256x128xf32> -> vector<256x128xf32>
    %13 = arith.addf %6, %12 : vector<256x128xf32>
    %14 = vector.extract_strided_slice %5 {offsets = [0, 1, 0], sizes = [16, 16, 64], strides = [1, 1, 1]} : vector<18x18x64xf32> to vector<16x16x64xf32>
    %15 = vector.shape_cast %14 : vector<16x16x64xf32> to vector<256x64xf32>
    %16 = arith.truncf %15 : vector<256x64xf32> to vector<256x64xbf16>
    %c1 = arith.constant 1 : index
    %c0_9 = arith.constant 0 : index
    %c0_10 = arith.constant 0 : index
    %17 = vector.load %arg2[%c1, %c0_9, %c0_10] : memref<9x64x128xbf16, #tpu.memory_space<vmem>>, vector<1x64x128xbf16>
    %18 = vector.shape_cast %17 : vector<1x64x128xbf16> to vector<64x128xbf16>
    %cst_11 = arith.constant dense<0.000000e+00> : vector<256x128xf32>
    %19 = tpu.matmul %16, %18, %cst_11 {dimension_numbers = #tpu.dot_dimension_numbers<[1], [0], [0], [1], [0, 0, 1, 1], [], []>} : vector<256x64xbf16>, vector<64x128xbf16>, vector<256x128xf32> -> vector<256x128xf32>
    %20 = arith.addf %13, %19 : vector<256x128xf32>
    %21 = vector.extract_strided_slice %5 {offsets = [0, 2, 0], sizes = [16, 16, 64], strides = [1, 1, 1]} : vector<18x18x64xf32> to vector<16x16x64xf32>
    %22 = vector.shape_cast %21 : vector<16x16x64xf32> to vector<256x64xf32>
    %23 = arith.truncf %22 : vector<256x64xf32> to vector<256x64xbf16>
    %c2 = arith.constant 2 : index
    %c0_12 = arith.constant 0 : index
    %c0_13 = arith.constant 0 : index
    %24 = vector.load %arg2[%c2, %c0_12, %c0_13] : memref<9x64x128xbf16, #tpu.memory_space<vmem>>, vector<1x64x128xbf16>
    %25 = vector.shape_cast %24 : vector<1x64x128xbf16> to vector<64x128xbf16>
    %cst_14 = arith.constant dense<0.000000e+00> : vector<256x128xf32>
    %26 = tpu.matmul %23, %25, %cst_14 {dimension_numbers = #tpu.dot_dimension_numbers<[1], [0], [0], [1], [0, 0, 1, 1], [], []>} : vector<256x64xbf16>, vector<64x128xbf16>, vector<256x128xf32> -> vector<256x128xf32>
    %27 = arith.addf %20, %26 : vector<256x128xf32>
    %28 = vector.extract_strided_slice %5 {offsets = [1, 0, 0], sizes = [16, 16, 64], strides = [1, 1, 1]} : vector<18x18x64xf32> to vector<16x16x64xf32>
    %29 = vector.shape_cast %28 : vector<16x16x64xf32> to vector<256x64xf32>
    %30 = arith.truncf %29 : vector<256x64xf32> to vector<256x64xbf16>
    %c3 = arith.constant 3 : index
    %c0_15 = arith.constant 0 : index
    %c0_16 = arith.constant 0 : index
    %31 = vector.load %arg2[%c3, %c0_15, %c0_16] : memref<9x64x128xbf16, #tpu.memory_space<vmem>>, vector<1x64x128xbf16>
    %32 = vector.shape_cast %31 : vector<1x64x128xbf16> to vector<64x128xbf16>
    %cst_17 = arith.constant dense<0.000000e+00> : vector<256x128xf32>
    %33 = tpu.matmul %30, %32, %cst_17 {dimension_numbers = #tpu.dot_dimension_numbers<[1], [0], [0], [1], [0, 0, 1, 1], [], []>} : vector<256x64xbf16>, vector<64x128xbf16>, vector<256x128xf32> -> vector<256x128xf32>
    %34 = arith.addf %27, %33 : vector<256x128xf32>
    %35 = vector.extract_strided_slice %5 {offsets = [1, 1, 0], sizes = [16, 16, 64], strides = [1, 1, 1]} : vector<18x18x64xf32> to vector<16x16x64xf32>
    %36 = vector.shape_cast %35 : vector<16x16x64xf32> to vector<256x64xf32>
    %37 = arith.truncf %36 : vector<256x64xf32> to vector<256x64xbf16>
    %c4 = arith.constant 4 : index
    %c0_18 = arith.constant 0 : index
    %c0_19 = arith.constant 0 : index
    %38 = vector.load %arg2[%c4, %c0_18, %c0_19] : memref<9x64x128xbf16, #tpu.memory_space<vmem>>, vector<1x64x128xbf16>
    %39 = vector.shape_cast %38 : vector<1x64x128xbf16> to vector<64x128xbf16>
    %cst_20 = arith.constant dense<0.000000e+00> : vector<256x128xf32>
    %40 = tpu.matmul %37, %39, %cst_20 {dimension_numbers = #tpu.dot_dimension_numbers<[1], [0], [0], [1], [0, 0, 1, 1], [], []>} : vector<256x64xbf16>, vector<64x128xbf16>, vector<256x128xf32> -> vector<256x128xf32>
    %41 = arith.addf %34, %40 : vector<256x128xf32>
    %42 = vector.extract_strided_slice %5 {offsets = [1, 2, 0], sizes = [16, 16, 64], strides = [1, 1, 1]} : vector<18x18x64xf32> to vector<16x16x64xf32>
    %43 = vector.shape_cast %42 : vector<16x16x64xf32> to vector<256x64xf32>
    %44 = arith.truncf %43 : vector<256x64xf32> to vector<256x64xbf16>
    %c5 = arith.constant 5 : index
    %c0_21 = arith.constant 0 : index
    %c0_22 = arith.constant 0 : index
    %45 = vector.load %arg2[%c5, %c0_21, %c0_22] : memref<9x64x128xbf16, #tpu.memory_space<vmem>>, vector<1x64x128xbf16>
    %46 = vector.shape_cast %45 : vector<1x64x128xbf16> to vector<64x128xbf16>
    %cst_23 = arith.constant dense<0.000000e+00> : vector<256x128xf32>
    %47 = tpu.matmul %44, %46, %cst_23 {dimension_numbers = #tpu.dot_dimension_numbers<[1], [0], [0], [1], [0, 0, 1, 1], [], []>} : vector<256x64xbf16>, vector<64x128xbf16>, vector<256x128xf32> -> vector<256x128xf32>
    %48 = arith.addf %41, %47 : vector<256x128xf32>
    %49 = vector.extract_strided_slice %5 {offsets = [2, 0, 0], sizes = [16, 16, 64], strides = [1, 1, 1]} : vector<18x18x64xf32> to vector<16x16x64xf32>
    %50 = vector.shape_cast %49 : vector<16x16x64xf32> to vector<256x64xf32>
    %51 = arith.truncf %50 : vector<256x64xf32> to vector<256x64xbf16>
    %c6 = arith.constant 6 : index
    %c0_24 = arith.constant 0 : index
    %c0_25 = arith.constant 0 : index
    %52 = vector.load %arg2[%c6, %c0_24, %c0_25] : memref<9x64x128xbf16, #tpu.memory_space<vmem>>, vector<1x64x128xbf16>
    %53 = vector.shape_cast %52 : vector<1x64x128xbf16> to vector<64x128xbf16>
    %cst_26 = arith.constant dense<0.000000e+00> : vector<256x128xf32>
    %54 = tpu.matmul %51, %53, %cst_26 {dimension_numbers = #tpu.dot_dimension_numbers<[1], [0], [0], [1], [0, 0, 1, 1], [], []>} : vector<256x64xbf16>, vector<64x128xbf16>, vector<256x128xf32> -> vector<256x128xf32>
    %55 = arith.addf %48, %54 : vector<256x128xf32>
    %56 = vector.extract_strided_slice %5 {offsets = [2, 1, 0], sizes = [16, 16, 64], strides = [1, 1, 1]} : vector<18x18x64xf32> to vector<16x16x64xf32>
    %57 = vector.shape_cast %56 : vector<16x16x64xf32> to vector<256x64xf32>
    %58 = arith.truncf %57 : vector<256x64xf32> to vector<256x64xbf16>
    %c7 = arith.constant 7 : index
    %c0_27 = arith.constant 0 : index
    %c0_28 = arith.constant 0 : index
    %59 = vector.load %arg2[%c7, %c0_27, %c0_28] : memref<9x64x128xbf16, #tpu.memory_space<vmem>>, vector<1x64x128xbf16>
    %60 = vector.shape_cast %59 : vector<1x64x128xbf16> to vector<64x128xbf16>
    %cst_29 = arith.constant dense<0.000000e+00> : vector<256x128xf32>
    %61 = tpu.matmul %58, %60, %cst_29 {dimension_numbers = #tpu.dot_dimension_numbers<[1], [0], [0], [1], [0, 0, 1, 1], [], []>} : vector<256x64xbf16>, vector<64x128xbf16>, vector<256x128xf32> -> vector<256x128xf32>
    %62 = arith.addf %55, %61 : vector<256x128xf32>
    %63 = vector.extract_strided_slice %5 {offsets = [2, 2, 0], sizes = [16, 16, 64], strides = [1, 1, 1]} : vector<18x18x64xf32> to vector<16x16x64xf32>
    %64 = vector.shape_cast %63 : vector<16x16x64xf32> to vector<256x64xf32>
    %65 = arith.truncf %64 : vector<256x64xf32> to vector<256x64xbf16>
    %c8 = arith.constant 8 : index
    %c0_30 = arith.constant 0 : index
    %c0_31 = arith.constant 0 : index
    %66 = vector.load %arg2[%c8, %c0_30, %c0_31] : memref<9x64x128xbf16, #tpu.memory_space<vmem>>, vector<1x64x128xbf16>
    %67 = vector.shape_cast %66 : vector<1x64x128xbf16> to vector<64x128xbf16>
    %cst_32 = arith.constant dense<0.000000e+00> : vector<256x128xf32>
    %68 = tpu.matmul %65, %67, %cst_32 {dimension_numbers = #tpu.dot_dimension_numbers<[1], [0], [0], [1], [0, 0, 1, 1], [], []>} : vector<256x64xbf16>, vector<64x128xbf16>, vector<256x128xf32> -> vector<256x128xf32>
    %69 = arith.addf %62, %68 : vector<256x128xf32>
    %c0_33 = arith.constant 0 : index
    %c0_34 = arith.constant 0 : index
    %70 = vector.load %arg3[%c0_33, %c0_34] : memref<1x128xf32, #tpu.memory_space<vmem>>, vector<1x128xf32>
    %71 = vector.broadcast %70 : vector<1x128xf32> to vector<256x128xf32>
    %72 = arith.addf %69, %71 : vector<256x128xf32>
    %cst_35 = arith.constant 0.000000e+00 : f32
    %73 = vector.broadcast %cst_35 : f32 to vector<256x128xf32>
    %74 = arith.maximumf %72, %73 : vector<256x128xf32>
    %75 = arith.truncf %74 : vector<256x128xf32> to vector<256x128xbf16>
    %c0_36 = arith.constant 0 : index
    %c0_37 = arith.constant 0 : index
    %76 = vector.load %arg4[%c0_36, %c0_37] : memref<128x128xbf16, #tpu.memory_space<vmem>>, vector<128x128xbf16>
    %cst_38 = arith.constant dense<0.000000e+00> : vector<256x128xf32>
    %77 = tpu.matmul %75, %76, %cst_38 {dimension_numbers = #tpu.dot_dimension_numbers<[1], [0], [0], [1], [0, 0, 1, 1], [], []>} : vector<256x128xbf16>, vector<128x128xbf16>, vector<256x128xf32> -> vector<256x128xf32>
    %c0_39 = arith.constant 0 : index
    %c0_40 = arith.constant 0 : index
    %78 = vector.load %arg5[%c0_39, %c0_40] : memref<1x128xf32, #tpu.memory_space<vmem>>, vector<1x128xf32>
    %79 = vector.broadcast %78 : vector<1x128xf32> to vector<256x128xf32>
    %80 = arith.addf %77, %79 : vector<256x128xf32>
    %81 = vector.shape_cast %80 : vector<256x128xf32> to vector<16x16x128xf32>
    %c0_41 = arith.constant 0 : index
    %c0_42 = arith.constant 0 : index
    %c0_43 = arith.constant 0 : index
    %c0_44 = arith.constant 0 : index
    %82 = vector.load %arg6[%c0_41, %c0_42, %c0_43, %c0_44] : memref<1x16x16x128xf32, #tpu.memory_space<vmem>>, vector<1x16x16x128xf32>
    %83 = vector.shape_cast %82 : vector<1x16x16x128xf32> to vector<16x16x128xf32>
    %84 = vector.shape_cast %81 : vector<16x16x128xf32> to vector<1x16x16x128xf32>
    tpu.vector_store %arg6[%c0_41, %c0_42, %c0_43, %c0_44], %84 {strides = array<i32>} : memref<1x16x16x128xf32, #tpu.memory_space<vmem>>, vector<1x16x16x128xf32>,
    return
  }
  func.func @transform_0(%arg0: i32) -> (i32, i32, i32, i32) {
    %c0_i32 = arith.constant 0 : i32
    %c0_i32_0 = arith.constant 0 : i32
    %c0_i32_1 = arith.constant 0 : i32
    %c0_i32_2 = arith.constant 0 : i32
    return %arg0, %c0_i32, %c0_i32_0, %c0_i32_1 : i32, i32, i32, i32
  }
  func.func @transform_1(%arg0: i32) -> (i32, i32, i32) {
    %c0_i32 = arith.constant 0 : i32
    %c0_i32_0 = arith.constant 0 : i32
    %c0_i32_1 = arith.constant 0 : i32
    %c0_i32_2 = arith.constant 0 : i32
    return %c0_i32, %c0_i32_0, %c0_i32_1 : i32, i32, i32
  }
  func.func @transform_2(%arg0: i32) -> (i32, i32) {
    %c0_i32 = arith.constant 0 : i32
    %c0_i32_0 = arith.constant 0 : i32
    %c0_i32_1 = arith.constant 0 : i32
    return %c0_i32, %c0_i32_0 : i32, i32
  }
  func.func @transform_3(%arg0: i32) -> (i32, i32) {
    %c0_i32 = arith.constant 0 : i32
    %c0_i32_0 = arith.constant 0 : i32
    %c0_i32_1 = arith.constant 0 : i32
    return %c0_i32, %c0_i32_0 : i32, i32
  }
  func.func @transform_4(%arg0: i32) -> (i32, i32) {
    %c0_i32 = arith.constant 0 : i32
    %c0_i32_0 = arith.constant 0 : i32
    %c0_i32_1 = arith.constant 0 : i32
    return %c0_i32, %c0_i32_0 : i32, i32
  }
  func.func @transform_5(%arg0: i32) -> (i32, i32, i32, i32) {
    %c0_i32 = arith.constant 0 : i32
    %c0_i32_0 = arith.constant 0 : i32
    %c0_i32_1 = arith.constant 0 : i32
    %c0_i32_2 = arith.constant 0 : i32
    return %arg0, %c0_i32, %c0_i32_0, %c0_i32_1 : i32, i32, i32, i32
  }
}

</mosaic_0001>

<bundles_post_ra>
// kernel: mask_head.1
= control target key start
LH: loop header
LB: loop body
LE: loop exit
PB: predicated region body
PF: predicated region fallthrough
CT: control target
= control target key end

     0   :  { %10 = vsyncpa [#allocation3], 0  ;;  %s5999_s0 = inlined_call_operand.hbm [shape: f32[2,16,16,64], index: 0, kind: input, shape index: {}]   ;;  %s6000_s1 = inlined_call_operand.hbm [shape: bf16[9,64,128], index: 1, kind: input, shape index: {}]   ;;  %s6001_s2 = inlined_call_operand.vmem [shape: f32[1,128], index: 2, kind: input, shape index: {}]   ;;  %s6002_s3 = inlined_call_operand.hbm [shape: bf16[128,128], index: 3, kind: input, shape index: {}]   ;;  %s6003_s4 = inlined_call_operand.vmem [shape: f32[1,128], index: 4, kind: input, shape index: {}]   ;;  %s6004_s5 = inlined_call_operand.hbm [shape: f32[2,16,16,128], index: 5, kind: output, shape index: {}]  }
   0x1   :  { %12 = vsyncpa [#allocation3 + $0x1], 0 }
   0x2   :  { %13 = vsyncpa [#allocation6], 0 }
   0x3   :  { %14 = vsyncpa [#allocation4], 0 }
   0x4   :  { %16 = vsyncpa [#allocation4 + $0x1], 0  ;;  %s4773_s18 = smov 0   ;;  %s4775_s19 = smov 0  }
   0x5   :  { %s4777_s20 = smov 0   ;;  %s4779_s21 = smov 0  }
   0x6 LB: > { %s4794_s22 = sadd.s32 4294967295, %s4730_s21   ;;  %s3378_s23 = sadd.s32 4294967294, %s4730_s21   ;;  %s4730_s21 = sphi %s4779_s21, %s6095_s21   ;;  %s4726_s20 = sphi %s4777_s20, %s6094_s20   ;;  %s4722_s19 = sphi %s4775_s19, %s6093_s19   ;;  %s4718_s18 = sphi %s4773_s18, %s6092_s18  }
   0x7   : > { %p42_p0 = scmp.ne.s32.totalorder %s4722_s19, %s4718_s18  ;;  %p6005_p1 = scmp.eq.s32.totalorder %s4794_s22, 0 }
   0x8   : > { %p156_p3 = scmp.eq.s32.totalorder %s3378_s23, 1  ;;  %p3379_p5 = scmp.ge.s32.totalorder %s4730_s21, 1 }
   0x9   : > { %p4803_p4 = por %p6005_p1, %p42_p0  ;;  %p163_p7 = scmp.lt.s32.totalorder %s4730_s21, 3 }
   0xa   : > { %p4808_p6 = por %p156_p3, %p42_p0  ;;  %s4732_s27 = smov [#allocation5]  }
   0xb   : > { %s6030_s24 = scalar_select %p4803_p4, 1, 0 }
   0xc   : > { %s6031_s25 = scalar_select %p4808_p6, 1, 0 }
   0xd   : > { %p4813_p8 = pnand %p3379_p5, %p163_p7  ;;  %s175_s28 = sshll.u32 %s4732_s27, 4  ;;  %s4817_s28 = int_to_ptr.vmem [resolvable:$true] %s175_s28 }
   0xe   : > { %s4733_s30 = smov [#allocation7]   ;;  %s4574_s9 = scalar_lea.hbm %s6000_s1, 4608 }
   0xf   : > { %p4468_p9 = pneg %p4813_p8  ;;  %s191_s6 = sshll.u32 %s4733_s30, 4  ;;  %s4828_s6 = int_to_ptr.vmem [resolvable:$true] %s191_s6 }
  0x10   : > { %p4575_p12 = scmp.ne.s32.totalorder %s6000_s1, %s4574_s9  ;;  %p4581_p5 = scmp.lt.u32.totalorder %s4574_s9, %s6000_s1 }
  0x11   : > { %p4824_p11 = pnand %p4468_p9, %p6005_p1 }
  0x13   : > { %p4576_p13 = pneg %p4824_p11 }
  0x15   : > { %p4577_p0 = pnand %p4576_p13, %p4575_p12 }
  0x17   : > { %p4578_p3 = pneg %p4577_p0 }
  0x19   : > { %p4583_p7 = pnand %p4581_p5, %p4578_p3 }
  0x1b   : > { %4586 = shalt.err (!%p4583_p7)
}
  0x1c   : > { %s4587_s14 = scalar_lea.vmem %s4817_s28, 4608  ;;  %p4595_p2 = scmp.lt.s32.totalorder %s4817_s28, %s4817_s28 }
  0x1d   : > { %p4588_p9 = scmp.ne.s32.totalorder %s4817_s28, %s4587_s14  ;;  %p4596_p12 = scmp.lt.s32.totalorder %s4587_s14, %s4587_s14 }
  0x1f   : > { %p4590_p10 = pnand %p4588_p9, %p4576_p13  ;;  %p4597_p0 = por %p4596_p12, %p4595_p2 }
  0x21   : > { %p4591_p1 = pneg %p4590_p10 }
  0x23   : > { %p4598_p6 = pnand %p4597_p0, %p4591_p1 }
  0x25   : > { %4601 = shalt.err (!%p4598_p6)
}
  0x26   : > { %s4734_s15 = smov 64   ;;  %s4735_s16 = smov 4  }
  0x27   : > { %4471 = dma.hbm_to_vmem [thread:$0]  (!%p4824_p11), %s6000_s1, 4608, %s4817_s28, [#allocation6], %s4734_s15, %s4734_s15, %s4735_s16  }
  0x28   : > { %s4602_s7 = scalar_lea.hbm %s6002_s3, 1024 }
  0x29   : > { %p4603_p2 = scmp.ne.s32.totalorder %s6002_s3, %s4602_s7  ;;  %p4609_p10 = scmp.lt.u32.totalorder %s4602_s7, %s6002_s3 }
  0x2b   : > { %p4605_p1 = pnand %p4603_p2, %p4576_p13 }
  0x2d   : > { %p4606_p6 = pneg %p4605_p1 }
  0x2f   : > { %p4611_p3 = pnand %p4609_p10, %p4606_p6 }
  0x31   : > { %4614 = shalt.err (!%p4611_p3)
}
  0x32   : > { %s4615_s28 = scalar_lea.vmem %s4828_s6, 1024  ;;  %p4623_p12 = scmp.lt.s32.totalorder %s4828_s6, %s4828_s6 }
  0x33   : > { %p4616_p5 = scmp.ne.s32.totalorder %s4828_s6, %s4615_s28  ;;  %p4624_p0 = scmp.lt.s32.totalorder %s4615_s28, %s4615_s28 }
  0x35   : > { %p4618_p7 = pnand %p4616_p5, %p4576_p13  ;;  %p4625_p2 = por %p4624_p0, %p4623_p12 }
  0x37   : > { %p4619_p9 = pneg %p4618_p7 }
  0x39   : > { %p4626_p1 = pnand %p4625_p2, %p4619_p9 }
  0x3b   : > { %4629 = shalt.err (!%p4626_p1)
}
  0x3c   : > { %4474 = dma.hbm_to_vmem [thread:$0]  (!%p4824_p11), %s6002_s3, 1024, %s4828_s6, [#allocation6], %s4734_s15, %s4734_s15, %s4735_s16  }
  0x3d   : > { %s4883_s14 = sadd.s32 1, %s4730_s21   ;;  %s29_s29 = sadd.s32 1, %s4726_s20 }
  0x3e   : > { %s26_s17 = ssub.s32 %s4730_s21, %s4883_s14  ;;  %p36_p13 = scmp.ne.s32.totalorder %s4726_s20, %s4722_s19 }
  0x3f   : > { %p27_p6 = scmp.eq.s32.totalorder %s26_s17, 0  ;;  %p37_p10 = scmp.eq.s32.totalorder %s4730_s21, 0 }
  0x40   : > { %p6034_p3 = scmp.eq.s32.totalorder %s4794_s22, 1  ;;  %p4485_p7 = scmp.lt.s32.totalorder %s4730_s21, 2 }
  0x41   : > { %s4899_s27 = scalar_select %p27_p6, %s4726_s20, %s29_s29  }
  0x42   : > { %p4893_p5 = por %p6034_p3, %p36_p13  ;;  %p38_p9 = por %p37_p10, %p36_p13 }
  0x43   : > { %s208_s30 = sand.u32 1, %s4726_s20   ;;  %s3586_s6 = sshll.u32 %s4730_s21, 12 }
  0x44   : > { %s6035_s23 = scalar_select %p4893_p5, 1, 0 }
  0x45   : > { %s3383_s7 = sshll.u32 %s208_s30, 8  ;;  %s4906_s8 = scalar_lea.hbm %s5999_s0, %s3586_s6 }
  0x46   : > { %s212_s9 = scalar_lea.vmem [#allocation2], %s3383_s7  ;;  %p4910_p11 = pnand %p4485_p7, %p38_p9 }
  0x47   : > { %s219_s10 = sshll.u32 %s212_s9, 4  ;;  %s4914_s28 = scalar_lea.sflag [#allocation3], %s208_s30  ;;  %s4908_s10 = int_to_ptr.vmem [resolvable:$true] %s219_s10 }
  0x48   : > { %s4630_s12 = scalar_lea.hbm %s4906_s8, 4096  ;;  %p4632_p0 = pneg %p4910_p11 }
  0x49   : > { %p4631_p12 = scmp.ne.s32.totalorder %s4906_s8, %s4630_s12  ;;  %s4635_s17 = scalar_lea.hbm %s5999_s0, 8192 }
  0x4a   : > { %p4636_p13 = scmp.lt.u32.totalorder %s4906_s8, %s5999_s0  ;;  %p4637_p6 = scmp.lt.u32.totalorder %s4635_s17, %s4630_s12 }
  0x4b   : > { %p4633_p2 = pnand %p4632_p0, %p4631_p12  ;;  %p4639_p3 = scmp.lt.u32.totalorder %s4630_s12, %s4906_s8 }
  0x4c   : > { %p4638_p10 = por %p4637_p6, %p4636_p13 }
  0x4d   : > { %p4634_p1 = pneg %p4633_p2 }
  0x4e   : > { %p4640_p7 = por %p4639_p3, %p4638_p10 }
  0x50   : > { %p4641_p9 = pnand %p4640_p7, %p4634_p1 }
  0x52   : > { %4644 = shalt.err (!%p4641_p9)
}
  0x53   : > { %s4645_s30 = scalar_lea.vmem %s4908_s10, 4096  ;;  %s4736_s15 = smov [#allocation2]  }
  0x54   : > { %p4646_p12 = scmp.ne.s32.totalorder %s4908_s10, %s4645_s30  ;;  %s4650_s16 = sshll.u32 %s4736_s15, 4  ;;  %s4651_s16 = int_to_ptr.vmem [resolvable:$false] %s4650_s16 }
  0x55   : > { %s4652_s9 = scalar_lea.vmem %s4651_s16, 8192  ;;  %p4653_p4 = scmp.lt.s32.totalorder %s4908_s10, %s4651_s16 }
  0x56   : > { %p4648_p2 = pnand %p4646_p12, %p4632_p0  ;;  %p4654_p13 = scmp.lt.s32.totalorder %s4652_s9, %s4645_s30 }
  0x58   : > { %p4649_p5 = pneg %p4648_p2  ;;  %p4655_p6 = por %p4654_p13, %p4653_p4 }
  0x5a   : > { %p4656_p10 = pnand %p4655_p6, %p4649_p5 }
  0x5c   : > { %4659 = shalt.err (!%p4656_p10)
}
  0x5d   : > { %s4737_s12 = smov 128   ;;  %s4738_s13 = smov 8  }
  0x5e   : > { %4478 = dma.hbm_to_vmem [thread:$0]  (!%p4910_p11), %s4906_s8, 4096, %s4908_s10, %s4914_s28, %s4737_s12, %s4737_s12, %s4738_s13  }
  0x5f   : > { %231 = sbr.rel (%p4813_p8) target bundleno = 896 (0x380), region = 40 }
  0x66   : > { %s4945_s29 = sand.u32 1, %s4722_s19   ;;  %p6037_p4 = scmp.ne.s32.totalorder %s6030_s24, 0 }
  0x67   : > { %s3387_s17 = sshll.u32 %s4945_s29, 8  ;;  %s234_s7 = scalar_lea.sflag [#allocation3], %s4945_s29 }
  0x68   : > { %s4951_s6 = scalar_lea.vmem [#allocation2], %s3387_s17 }
  0x69   : > { %4705 = dma.done.wait (%p6037_p4), %s234_s7, 4096  }
  0x6a   : > { %4707 = vsyncadd (%p6037_p4), %s234_s7, 4294963200  ;;  %p6038_p5 = scmp.eq.s32.totalorder %s4794_s22, 0 }
  0x6c   : > { %4709 = dma.done.wait (%p6038_p5), [#allocation6], 5632   ;;  %p6039_p8 = pmov %p6038_p5 }
  0x6d   : > { %vm338_vm0 = vcmask 1040384   ;;  %v4739_v0 = vmov 0.0   ;;  %vm529_vm1 = vcmask 1046528   ;;  %vm691_vm2 = vcmask 523264   ;;  %v4530_v9 = vld [vmem:[#allocation5 + $0x20] sm:$0xff]   ;;  %v4532_v12 = vld [vmem:[#allocation5 + $0x28] sm:$0xff]  }
  0x6e   : > { %4711 = vsyncadd (%p6039_p8), [#allocation6], 4294961664  ;;  %v4961_v1 = vrot.slane %v4739_v0, 7  ;;  %v4531_v11 = vld [vmem:[#allocation5 + $0x80] sm:$0xff]   ;;  %3792 = vmatprep.subr.bf16.mxu1 %v4530_v9  ;;  %v4533_v13 = vld [vmem:[#allocation5 + $0x88] sm:$0xff]   ;;  %vm1134_vm3 = vcmask 1045504  }
  0x6f   : > { %3952 = vmatprep.subr.bf16.mxu0 %v4531_v11  ;;  %3793 = vmatpush3.bf16.msra.mxu1 %v4530_v9  ;;  %v4534_v14 = vld [vmem:[#allocation5 + $0x30] sm:$0xff]   ;;  %v4536_v16 = vld [vmem:[#allocation5 + $0x38] sm:$0xff]   ;;  %v273_v18 = vld [vmem:[%s4951_s6] sm:$0xff]  ;;  %s5884_s11 = scalar_lea.vmem [#allocation8], %s3387_s17  ;;  %s3587_s28 = sshll.u32 %s4794_s22, 12 }
  0x70   : > { %v4965_v2 = vsel %vm338_vm0, 0.0, %v4961_v1  ;;  %v4969_v3 = vsel %vm338_vm0, %v4961_v1, 0.0  ;;  %v531_v4 = vrot.slane %v4961_v1, 1  ;;  %3953 = vmatpush3.bf16.msra.mxu0 %v4531_v11  ;;  %3794 = vmatprep.subr.bf16.mxu1 %v4532_v12  ;;  %v4535_v15 = vld [vmem:[#allocation5 + $0x90] sm:$0xff]   ;;  %v4537_v17 = vld [vmem:[#allocation5 + $0x98] sm:$0xff]   ;;  %v274_v19 = vld [vmem:[%s4951_s6 + $0x8] sm:$0xff]  ;;  %s5949_s9 = scalar_lea.hbm %s6004_s5, %s3587_s28 }
  0x71   : > { %6040 = vst [vmem:[#allocation12_spill] sm:$0xff] %v4969_v3  ;;  %v530_v5 = vrot.slane %v4965_v2, 1  ;;  %v533_v6 = vrot.slane %v4969_v3, 1  ;;  %3954 = vmatprep.subr.bf16.mxu0 %v4533_v13  ;;  %v275_v20 = vld [vmem:[%s4951_s6 + $0x10] sm:$0xff]  ;;  %v341_v21 = vrot.slane %v273_v18, 7  ;;  %v342_v22 = vrot.slane %v274_v19, 7 }
  0x72   : > { %v276_v23 = vld [vmem:[%s4951_s6 + $0x18] sm:$0xff]  ;;  %v344_v24 = vrot.slane %v275_v20, 7  ;;  %v4538_v36 = vld [vmem:[#allocation5 + $0xa0] sm:$0xff]   ;;  %v278_v41 = vld [vmem:[%s4951_s6 + $0x28] sm:$0xff]  ;;  %s3286_s30 = sshll.u32 %s5884_s11, 4  ;;  %s3273_s22 = scalar_lea.sflag [#allocation4], %s4945_s29  ;;  %s5951_s30 = int_to_ptr.vmem [resolvable:$true] %s3286_s30 }
  0x73   : > { %v532_v7 = vsel %vm529_vm1, %v530_v5, %v531_v4  ;;  %v534_v8 = vsel %vm529_vm1, %v531_v4, %v533_v6  ;;  %3795 = vmatpush3.bf16.msra.mxu1 %v4532_v12  ;;  %v345_v27 = vrot.slane %v276_v23, 7  ;;  %v4987_v28 = vsel %vm338_vm0, %v341_v21, %v342_v22  ;;  %v277_v40 = vld [vmem:[%s4951_s6 + $0x20] sm:$0xff]  ;;  %v279_v46 = vld [vmem:[%s4951_s6 + $0x30] sm:$0xff]  ;;  %v280_v47 = vld [vmem:[%s4951_s6 + $0x38] sm:$0xff]  ;;  %s4660_s12 = scalar_lea.vmem %s5951_s30, 4096  ;;  %p6089_p0 = scmp.ne.s32.totalorder %s6035_s23, 0 }
  0x74   : > { %v4976_v10 = vpack.c.bf16 %v534_v8, %v532_v7  ;;  %3955 = vmatpush3.bf16.msra.mxu0 %v4533_v13  ;;  %3796 = vmatprep.subr.bf16.mxu1 %v4534_v14  ;;  %v4990_v29 = vsel %vm338_vm0, 0.0, %v341_v21  ;;  %v4993_v30 = vsel %vm338_vm0, %v342_v22, 0.0  ;;  %v4996_v31 = vsel %vm338_vm0, 0.0, %v344_v24  ;;  %v281_v60 = vld [vmem:[%s4951_s6 + $0x40] sm:$0xff]  ;;  %v4539_v4 = vld [vmem:[#allocation5 + $0xa8] sm:$0xff]   ;;  %v283_v11 = vld [vmem:[%s4951_s6 + $0x50] sm:$0xff]  ;;  %p4661_p11 = scmp.ne.s32.totalorder %s5951_s30, %s4660_s12 }
  0x75   : > { %3956 = vmatprep.subr.bf16.mxu0 %v4535_v15  ;;  %v5000_v32 = vpack.c.bf16 %v4987_v28, %v4990_v29  ;;  %v535_v33 = vrot.slane %v4990_v29, 1  ;;  %v536_v34 = vrot.slane %v4987_v28, 1  ;;  %v538_v35 = vrot.slane %v4993_v30, 1  ;;  %v282_v9 = vld [vmem:[%s4951_s6 + $0x48] sm:$0xff]  ;;  %v285_v21 = vld [vmem:[%s4951_s6 + $0x60] sm:$0xff]  ;;  %s4740_s13 = smov [#allocation8]  }
  0x76   : > { %6041 = vst [vmem:[#allocation13_spill] sm:$0xff] %v4976_v10  ;;  %3800 = vmatprep.mubr.msk.bf16.mxu1 %vm691_vm2, %v4976_v10  ;;  %v5008_v39 = vsel %vm338_vm0, %v344_v24, %v345_v27  ;;  %v5015_v44 = vsel %vm338_vm0, %v345_v27, 0.0  ;;  %v540_v45 = vrot.slane %v4996_v31, 1  ;;  %v347_v54 = vrot.slane %v277_v40, 7  ;;  %p4662_p1 = pnand %p4661_p11, %p6089_p0  ;;  %s4664_s17 = sshll.u32 %s4740_s13, 4  ;;  %s4665_s17 = int_to_ptr.vmem [resolvable:$false] %s4664_s17 }
  0x77   : > { %3797 = vmatpush3.bf16.msra.mxu1 %v4534_v14  ;;  %6042 = vst [vmem:[#allocation14_spill] sm:$0xff] %v5000_v32  ;;  %v537_v42 = vsel %vm529_vm1, %v535_v33, %v536_v34  ;;  %v539_v43 = vsel %vm529_vm1, %v536_v34, %v538_v35  ;;  %v541_v49 = vrot.slane %v5008_v39, 1  ;;  %v543_v50 = vrot.slane %v5015_v44, 1  ;;  %v286_v33 = vld [vmem:[%s4951_s6 + $0x68] sm:$0xff]  ;;  %v4540_v34 = vld [vmem:[#allocation5 + $0xb0] sm:$0xff]   ;;  %v4541_v35 = vld [vmem:[#allocation5] sm:$0xff]   ;;  %p4667_p7 = scmp.lt.s32.totalorder %s5951_s30, %s4665_s17 }
  0x78   : > { %3957 = vmatpush3.bf16.msra.mxu0 %v4535_v15  ;;  %3798 = vmatprep.subr.bf16.mxu1 %v4536_v16  ;;  %v643_v48 = vpack.c.bf16 %v539_v43, %v537_v42  ;;  %v348_v55 = vrot.slane %v278_v41, 7  ;;  %v350_v58 = vrot.slane %v279_v46, 7  ;;  %v351_v59 = vrot.slane %v280_v47, 7  ;;  %p4663_p3 = pneg %p4662_p1  ;;  %s4666_s7 = scalar_lea.vmem %s4665_s17, 8192 }
  0x79   : > { %3958 = vmatprep.subr.bf16.mxu0 %v4537_v17  ;;  %v542_v56 = vsel %vm529_vm1, %v540_v45, %v541_v49  ;;  %v544_v57 = vsel %vm529_vm1, %v541_v49, %v543_v50  ;;  %v5036_v63 = vsel %vm338_vm0, 0.0, %v347_v54  ;;  %v353_v15 = vrot.slane %v281_v60, 7  ;;  %v4543_v49 = vld [vmem:[#allocation5 + $0x8] sm:$0xff]   ;;  %p4668_p9 = scmp.lt.s32.totalorder %s4666_s7, %s4660_s12 }
  0x7a   : > { %3960 = vmatprep.mubr.msk.bf16.mxu0 %vm691_vm2, %v643_v48  ;;  %v5030_v61 = vpack.c.bf16 %v544_v57, %v542_v56  ;;  %v5033_v62 = vsel %vm338_vm0, %v347_v54, %v348_v55  ;;  %v5039_v0 = vsel %vm338_vm0, %v348_v55, 0.0  ;;  %v545_v5 = vrot.slane %v5036_v63, 1  ;;  %v288_v57 = vld [vmem:[%s4951_s6 + $0x78] sm:$0xff] }
  0x7b   : > { %3799 = vmatpush3.bf16.msra.mxu1 %v4536_v16  ;;  %v546_v6 = vrot.slane %v5033_v62, 1  ;;  %v548_v7 = vrot.slane %v5039_v0, 1  ;;  %v5045_v8 = vsel %vm338_vm0, %v350_v58, %v351_v59  ;;  %v5054_v12 = vsel %vm338_vm0, 0.0, %v350_v58  ;;  %v284_v16 = vld [vmem:[%s4951_s6 + $0x58] sm:$0xff]  ;;  %p4669_p12 = por %p4668_p9, %p4667_p7 }
  0x7c   : > { %3959 = vmatpush3.bf16.msra.mxu0 %v4537_v17  ;;  %6043 = vst [vmem:[#allocation15_spill] sm:$0xff] %v5030_v61  ;;  %v5057_v13 = vsel %vm338_vm0, %v351_v59, 0.0  ;;  %v551_v14 = vrot.slane %v5045_v8, 1  ;;  %v550_v19 = vrot.slane %v5054_v12, 1  ;;  %v354_v23 = vrot.slane %v282_v9, 7  ;;  %3832 = vmatprep.subr.bf16.mxu1 %v4541_v35  ;;  %v4544_v9 = vld [vmem:[#allocation5 + $0x10] sm:$0xff]  }
  0x7d   : > { %3992 = vmatprep.subr.bf16.mxu0 %v4538_v36  ;;  %v547_v17 = vsel %vm529_vm1, %v545_v5, %v546_v6  ;;  %v549_v18 = vsel %vm529_vm1, %v546_v6, %v548_v7  ;;  %v553_v20 = vrot.slane %v5057_v13, 1  ;;  %v5069_v24 = vsel %vm338_vm0, 0.0, %v353_v15  ;;  %v289_v6 = vld [vmem:[%s4951_s6 + $0x80] sm:$0xff]  ;;  %v4542_v7 = vld [vmem:[#allocation5 + $0xb8] sm:$0xff]   ;;  %p4670_p2 = pnand %p4669_p12, %p4663_p3 }
  0x7e   : > { %3801 = vmatmul.mubr.msk.bf16.vlgmr.msra.gmra.mrb[0].mxu1 %vm691_vm2, %v643_v48  ;;  %v5066_v22 = vpack.c.bf16 %v549_v18, %v547_v17  ;;  %v356_v27 = vrot.slane %v283_v11, 7  ;;  %v555_v41 = vrot.slane %v5069_v24, 1  ;;  %v357_v42 = vrot.slane %v284_v16, 7  ;;  %v287_v48 = vld [vmem:[%s4951_s6 + $0x70] sm:$0xff] }
  0x7f   : > { %3961 = vmatmul.mubr.msk.bf16.vlgmr.msra.gmra.mrb[0].mxu0 %vm691_vm2, %v5030_v61  ;;  %3804 = vmatprep.mubr.msk.bf16.mxu1 %vm691_vm2, %v5030_v61  ;;  %v554_v40 = vsel %vm529_vm1, %v551_v14, %v553_v20  ;;  %v5080_v45 = vsel %vm338_vm0, %v353_v15, %v354_v23  ;;  %v5083_v46 = vsel %vm338_vm0, %v354_v23, 0.0  ;;  %v359_v5 = vrot.slane %v285_v21, 7  ;;  %v290_v20 = vld [vmem:[%s4951_s6 + $0x88] sm:$0xff]  ;;  %v291_v21 = vld [vmem:[%s4951_s6 + $0x90] sm:$0xff] }
  0x80   : > { %3993 = vmatpush3.bf16.msra.mxu0 %v4538_v36  ;;  %6044 = vst [vmem:[#allocation16_spill] sm:$0xff] %v5066_v22  ;;  %v552_v36 = vsel %vm529_vm1, %v550_v19, %v551_v14  ;;  %3964 = vmatprep.mubr.msk.bf16.mxu0 %vm691_vm2, %v5066_v22  ;;  %6046 = vst [vmem:[#allocation18_spill] sm:$0xff] %v5083_v46  ;;  %v5086_v47 = vsel %vm338_vm0, 0.0, %v356_v27  ;;  %v556_v50 = vrot.slane %v5080_v45, 1  ;;  %v558_v54 = vrot.slane %v5083_v46, 1 }
  0x81   : > { %3994 = vmatprep.subr.bf16.mxu0 %v4539_v4  ;;  %v5077_v43 = vpack.c.bf16 %v554_v40, %v552_v36  ;;  %v5092_v55 = vsel %vm338_vm0, %v356_v27, %v357_v42  ;;  %v5095_v56 = vsel %vm338_vm0, %v357_v42, 0.0  ;;  %3833 = vmatpush3.bf16.msra.mxu1 %v4541_v35  ;;  %v560_v58 = vrot.slane %v5086_v47, 1  ;;  %v292_v36 = vld [vmem:[%s4951_s6 + $0x98] sm:$0xff] }
  0x82   : > { %v561_v59 = vrot.slane %v5092_v55, 1  ;;  %v563_v60 = vrot.slane %v5095_v56, 1  ;;  %v559_v11 = vsel %vm529_vm1, %v556_v50, %v558_v54  ;;  %v360_v14 = vrot.slane %v286_v33, 7  ;;  %3834 = vmatprep.subr.bf16.mxu1 %v4543_v49  ;;  %v4545_v40 = vld [vmem:[#allocation5 + $0x18] sm:$0xff]  }
  0x83   : > { %6045 = vst [vmem:[#allocation17_spill] sm:$0xff] %v5077_v43  ;;  %v362_v15 = vrot.slane %v287_v48, 7  ;;  %v5115_v19 = vsel %vm338_vm0, 0.0, %v359_v5 }
  0x84   : > { %3995 = vmatpush3.bf16.msra.mxu0 %v4539_v4  ;;  %v557_v4 = vsel %vm529_vm1, %v555_v41, %v556_v50  ;;  %v562_v17 = vsel %vm529_vm1, %v560_v58, %v561_v59  ;;  %v564_v18 = vsel %vm529_vm1, %v561_v59, %v563_v60  ;;  %v5122_v27 = vsel %vm338_vm0, %v359_v5, %v360_v14  ;;  %v5129_v41 = vld [vmem:[#allocation5 + $0xc0] sm:$0xff]  }
  0x85   : > { %3996 = vmatprep.subr.bf16.mxu0 %v4540_v34  ;;  %v5110_v16 = vpack.c.bf16 %v559_v11, %v557_v4  ;;  %v5119_v23 = vpack.c.bf16 %v564_v18, %v562_v17  ;;  %v5125_v33 = vsel %vm338_vm0, %v360_v14, 0.0  ;;  %v565_v35 = vrot.slane %v5115_v19, 1  ;;  %3835 = vmatpush3.bf16.msra.mxu1 %v4543_v49  ;;  %6049 = vst [vmem:[#allocation21_spill] sm:$0xff] %v5129_v41  ;;  %v293_v18 = vld [vmem:[%s4951_s6 + $0xa0] sm:$0xff] }
  0x86   : > { %3805 = vmatmul.mubr.msk.bf16.gmra.mrb[4].mxu1 %vm691_vm2, %v5066_v22  ;;  %v566_v42 = vrot.slane %v5122_v27, 1  ;;  %v568_v48 = vrot.slane %v5125_v33, 1  ;;  %v363_v50 = vrot.slane %v288_v57, 7  ;;  %v5136_v54 = vsel %vm338_vm0, 0.0, %v362_v15  ;;  %3836 = vmatprep.subr.bf16.mxu1 %v4544_v9 }
  0x87   : > { %3808 = vmatprep.mubr.msk.bf16.mxu1 %vm691_vm2, %v5077_v43  ;;  %3965 = vmatmul.mubr.msk.bf16.gmra.mrb[4].mxu0 %vm691_vm2, %v5077_v43  ;;  %6047 = vst [vmem:[#allocation19_spill] sm:$0xff] %v5110_v16  ;;  %6048 = vst [vmem:[#allocation20_spill] sm:$0xff] %v5119_v23  ;;  %v365_v49 = vrot.slane %v289_v6, 7  ;;  %v366_v58 = vrot.slane %v290_v20, 7  ;;  %v368_v59 = vrot.slane %v291_v21, 7  ;;  %v294_v20 = vld [vmem:[%s4951_s6 + $0xa8] sm:$0xff] }
  0x88   : > { %3997 = vmatpush3.bf16.msra.mxu0 %v4540_v34  ;;  %3968 = vmatprep.mubr.msk.bf16.mxu0 %vm691_vm2, %v5110_v16  ;;  %v570_v34 = vrot.slane %v5136_v54, 1  ;;  %v567_v60 = vsel %vm529_vm1, %v565_v35, %v566_v42  ;;  %v569_v5 = vsel %vm529_vm1, %v566_v42, %v568_v48  ;;  %v5142_v4 = vsel %vm338_vm0, %v362_v15, %v363_v50  ;;  %v295_v48 = vld [vmem:[%s4951_s6 + $0xb0] sm:$0xff] }
  0x89   : > { %3998 = vmatprep.subr.bf16.mxu0 %v4542_v7  ;;  %v5145_v57 = vsel %vm338_vm0, %v363_v50, 0.0  ;;  %v5147_v11 = vpack.c.bf16 %v569_v5, %v567_v60  ;;  %v571_v6 = vrot.slane %v5142_v4, 1  ;;  %v5152_v17 = vsel %vm338_vm0, %v365_v49, %v366_v58  ;;  %3837 = vmatpush3.bf16.msra.mxu1 %v4544_v9  ;;  %v296_v50 = vld [vmem:[%s4951_s6 + $0xb8] sm:$0xff]  ;;  %v297_v60 = vld [vmem:[%s4951_s6 + $0xc0] sm:$0xff] }
  0x8a   : > { %v573_v14 = vrot.slane %v5145_v57, 1  ;;  %v5159_v15 = vsel %vm338_vm0, 0.0, %v365_v49  ;;  %v5162_v21 = vsel %vm338_vm0, %v366_v58, 0.0  ;;  %v576_v35 = vrot.slane %v5152_v17, 1  ;;  %3838 = vmatprep.subr.bf16.mxu1 %v4545_v40  ;;  %v5168_v5 = vld [vmem:[#allocation5 + $0x40] sm:$0xff]  }
  0x8b   : > { %6050 = vst [vmem:[#allocation22_spill] sm:$0xff] %v5147_v11  ;;  %v369_v42 = vrot.slane %v292_v36, 7  ;;  %6051 = vst [vmem:[#allocation23_spill] sm:$0xff] %v5168_v5  ;;  %v575_v49 = vrot.slane %v5159_v15, 1  ;;  %v578_v58 = vrot.slane %v5162_v21, 1  ;;  %v5183_v26 = vsel %vm338_vm0, 0.0, %v368_v59 }
  0x8c   : > { %3999 = vmatpush3.bf16.msra.mxu0 %v4542_v7  ;;  %v572_v7 = vsel %vm529_vm1, %v570_v34, %v571_v6  ;;  %v574_v9 = vsel %vm529_vm1, %v571_v6, %v573_v14  ;;  %v580_v25 = vrot.slane %v5183_v26, 1  ;;  %v371_v53 = vrot.slane %v293_v18, 7 }
  0x8d   : > { %4032 = vmatprep.subr.bf16.mxu0 %v5129_v41  ;;  %v5180_v36 = vsel %vm338_vm0, %v368_v59, %v369_v42  ;;  %v5186_v34 = vsel %vm338_vm0, %v369_v42, 0.0  ;;  %v577_v6 = vsel %vm529_vm1, %v575_v49, %v576_v35  ;;  %v579_v14 = vsel %vm529_vm1, %v576_v35, %v578_v58  ;;  %3839 = vmatpush3.bf16.msra.mxu1 %v4545_v40  ;;  %v298_v35 = vld [vmem:[%s4951_s6 + $0xc8] sm:$0xff] }
  0x8e   : > { %3809 = vmatmul.mubr.msk.bf16.gmra.mrb[8].mxu1 %vm691_vm2, %v5110_v16  ;;  %v581_v37 = vrot.slane %v5180_v36, 1  ;;  %v5194_v38 = vpack.c.bf16 %v574_v9, %v572_v7  ;;  %v583_v59 = vrot.slane %v5186_v34, 1  ;;  %v372_v42 = vrot.slane %v294_v20, 7  ;;  %3872 = vmatprep.subr.bf16.mxu1 %v5168_v5  ;;  %v299_v9 = vld [vmem:[%s4951_s6 + $0xd0] sm:$0xff] }
  0x8f   : > { %3812 = vmatprep.mubr.msk.bf16.mxu1 %vm691_vm2, %v5119_v23  ;;  %3969 = vmatmul.mubr.msk.bf16.gmra.mrb[8].mxu0 %vm691_vm2, %v5119_v23  ;;  %v5198_v51 = vpack.c.bf16 %v579_v14, %v577_v6  ;;  %v374_v49 = vrot.slane %v295_v48, 7  ;;  %v375_v52 = vrot.slane %v296_v50, 7  ;;  %v377_v58 = vrot.slane %v297_v60, 7  ;;  %v303_v5 = vld [vmem:[%s4951_s6 + $0xf0] sm:$0xff] }
  0x90   : > { %3972 = vmatprep.mubr.msk.bf16.mxu0 %vm691_vm2, %v5147_v11  ;;  %6052 = vst [vmem:[#allocation24_spill] sm:$0xff] %v5194_v38  ;;  %v582_v10 = vsel %vm529_vm1, %v580_v25, %v581_v37  ;;  %v5203_v40 = vsel %vm338_vm0, %v371_v53, %v372_v42  ;;  %v5206_v18 = vsel %vm338_vm0, 0.0, %v371_v53  ;;  %v5209_v20 = vsel %vm338_vm0, %v372_v42, 0.0  ;;  %v300_v25 = vld [vmem:[%s4951_s6 + $0xd8] sm:$0xff]  ;;  %v302_v42 = vld [vmem:[%s4951_s6 + $0xe8] sm:$0xff] }
  0x91   : > { %6053 = vst [vmem:[#allocation25_spill] sm:$0xff] %v5198_v51  ;;  %v584_v7 = vsel %vm529_vm1, %v581_v37, %v583_v59  ;;  %v585_v48 = vrot.slane %v5206_v18, 1  ;;  %v586_v50 = vrot.slane %v5203_v40, 1  ;;  %v588_v60 = vrot.slane %v5209_v20, 1  ;;  %v301_v59 = vld [vmem:[%s4951_s6 + $0xe0] sm:$0xff] }
  0x92   : > { %v5220_v6 = vsel %vm338_vm0, %v374_v49, %v375_v52  ;;  %v5223_v53 = vsel %vm338_vm0, 0.0, %v374_v49  ;;  %v5226_v14 = vsel %vm338_vm0, %v375_v52, 0.0  ;;  %v378_v37 = vrot.slane %v298_v35, 7 }
  0x93   : > { %v587_v23 = vsel %vm529_vm1, %v585_v48, %v586_v50  ;;  %v589_v16 = vsel %vm529_vm1, %v586_v50, %v588_v60  ;;  %v591_v43 = vrot.slane %v5220_v6, 1  ;;  %v593_v52 = vrot.slane %v5226_v14, 1 }
  0x94   : > { %v5240_v49 = vsel %vm338_vm0, %v377_v58, %v378_v37  ;;  %v5243_v35 = vsel %vm338_vm0, 0.0, %v377_v58  ;;  %v5247_v48 = vpack.c.bf16 %v584_v7, %v582_v10  ;;  %v5250_v50 = vsel %vm338_vm0, %v378_v37, 0.0 }
  0x95   : > { %v595_v60 = vrot.slane %v5243_v35, 1  ;;  %v5254_v22 = vpack.c.bf16 %v589_v16, %v587_v23  ;;  %v598_v61 = vrot.slane %v5250_v50, 1  ;;  %v380_v58 = vrot.slane %v299_v9, 7 }
  0x96   : > { %3813 = vmatmul.mubr.msk.bf16.gmra.mrb[12].mxu1 %vm691_vm2, %v5147_v11  ;;  %v590_v11 = vrot.slane %v5223_v53, 1  ;;  %6054 = vst [vmem:[#allocation26_spill] sm:$0xff] %v5247_v48  ;;  %v381_v41 = vrot.slane %v300_v25, 7  ;;  %v594_v10 = vsel %vm529_vm1, %v591_v43, %v593_v52  ;;  %v383_v7 = vrot.slane %v301_v59, 7  ;;  %v304_v59 = vld [vmem:[%s4951_s6 + $0xf8] sm:$0xff] }
  0x97   : > { %3816 = vmatprep.mubr.msk.bf16.mxu1 %vm691_vm2, %v5194_v38  ;;  %3973 = vmatmul.mubr.msk.bf16.gmra.mrb[12].mxu0 %vm691_vm2, %v5194_v38  ;;  %v596_v38 = vrot.slane %v5240_v49, 1  ;;  %v384_v46 = vrot.slane %v302_v42, 7  ;;  %v5265_v16 = vsel %vm338_vm0, 0.0, %v380_v58 }
  0x98   : > { %3976 = vmatprep.mubr.msk.bf16.mxu0 %vm691_vm2, %v5198_v51  ;;  %v592_v3 = vsel %vm529_vm1, %v590_v11, %v591_v43  ;;  %v5262_v32 = vsel %vm338_vm0, %v380_v58, %v381_v41  ;;  %v5268_v23 = vsel %vm338_vm0, %v381_v41, 0.0  ;;  %v600_v25 = vrot.slane %v5265_v16, 1 }
  0x99   : > { %v597_v37 = vsel %vm529_vm1, %v595_v60, %v596_v38  ;;  %6055 = vst [vmem:[#allocation27_spill] sm:$0xff] %v5262_v32  ;;  %6056 = vst [vmem:[#allocation28_spill] sm:$0xff] %v5268_v23  ;;  %v599_v9 = vsel %vm529_vm1, %v596_v38, %v598_v61  ;;  %v601_v11 = vrot.slane %v5262_v32, 1  ;;  %v603_v43 = vrot.slane %v5268_v23, 1 }
  0x9a   : > { %v5278_v42 = vsel %vm338_vm0, %v383_v7, %v384_v46  ;;  %v5281_v52 = vsel %vm338_vm0, 0.0, %v383_v7  ;;  %v5284_v41 = vsel %vm338_vm0, %v384_v46, 0.0  ;;  %v386_v38 = vrot.slane %v303_v5, 7 }
  0x9b   : > { %6057 = vst [vmem:[#allocation29_spill] sm:$0xff] %v5284_v41  ;;  %v602_v61 = vsel %vm529_vm1, %v600_v25, %v601_v11  ;;  %v604_v60 = vsel %vm529_vm1, %v601_v11, %v603_v43  ;;  %v605_v58 = vrot.slane %v5281_v52, 1  ;;  %v608_v46 = vrot.slane %v5284_v41, 1 }
  0x9c   : > { %v5294_v7 = vpack.c.bf16 %v604_v60, %v602_v61  ;;  %v387_v23 = vrot.slane %v304_v59, 7  ;;  %v5298_v5 = vsel %vm338_vm0, 0.0, %v386_v38  ;;  %v1143_v32 = vrot.slane %v4993_v30, 2 }
  0x9d   : > { %v5303_v25 = vpack.c.bf16 %v594_v10, %v592_v3  ;;  %v1769_v43 = vrot.slane %v5298_v5, 1  ;;  %v6060_v10 = vrot.slane %v5008_v39, 2 }
  0x9e   : > { %3817 = vmatmul.mubr.msk.bf16.gmra.mrb[16].mxu1 %vm691_vm2, %v5198_v51  ;;  %v606_v51 = vrot.slane %v5278_v42, 1  ;;  %v5311_v59 = vsel %vm338_vm0, %v386_v38, %v387_v23  ;;  %v5314_v60 = vsel %vm338_vm0, %v387_v23, 0.0  ;;  %v5332_v23 = vpack.c.bf16 %v5008_v39, %v4996_v31 }
  0x9f   : > { %3820 = vmatprep.mubr.msk.bf16.mxu1 %vm691_vm2, %v5247_v48  ;;  %3977 = vmatmul.mubr.msk.bf16.gmra.mrb[16].mxu0 %vm691_vm2, %v5247_v48  ;;  %v5307_v48 = vpack.c.bf16 %v599_v9, %v597_v37  ;;  %6058 = vst [vmem:[#allocation30_spill] sm:$0xff] %v5311_v59  ;;  %6059 = vst [vmem:[#allocation31_spill] sm:$0xff] %v5314_v60  ;;  %v1770_v41 = vrot.slane %v5311_v59, 1  ;;  %v1772_v3 = vrot.slane %v5314_v60, 1  ;;  %v6063_v9 = vmov %v6060_v10 }
  0xa0   : > { %3980 = vmatprep.mubr.msk.bf16.mxu0 %vm691_vm2, %v5254_v22  ;;  %v607_v11 = vsel %vm529_vm1, %v605_v58, %v606_v51  ;;  %v609_v61 = vsel %vm529_vm1, %v606_v51, %v608_v46  ;;  %v6061_v58 = vrot.slane %v4996_v31, 2  ;;  %v6062_v51 = vrot.slane %v5015_v44, 2 }
  0xa1   : > { %v5316_v30 = vpack.c.bf16 %v609_v61, %v607_v11  ;;  %v1150_v46 = vrot.slane %v5036_v63, 2  ;;  %v1151_v11 = vrot.slane %v5033_v62, 2  ;;  %v1771_v61 = vsel %vm529_vm1, %v1769_v43, %v1770_v41 }
  0xa2   : > { %v1147_v37 = vsel %vm1134_vm3, %v6061_v58, %v6060_v10  ;;  %v1149_v38 = vsel %vm1134_vm3, %v6063_v9, %v6062_v51  ;;  %v1773_v60 = vsel %vm529_vm1, %v1770_v41, %v1772_v3  ;;  %v1153_v44 = vrot.slane %v5039_v0, 2 }
  0xa3   : > { %v5338_v59 = vpack.c.bf16 %v1149_v38, %v1147_v37  ;;  %v5343_v10 = vpack.c.bf16 %v1773_v60, %v1771_v61  ;;  %v6064_v31 = vrot.slane %v4987_v28, 2  ;;  %v6065_v39 = vrot.slane %v4990_v29, 2 }
  0xa4   : > { %v5352_v43 = vpack.c.bf16 %v5033_v62, %v5036_v63  ;;  %v1155_v41 = vrot.slane %v5054_v12, 2  ;;  %v1156_v3 = vrot.slane %v5045_v8, 2  ;;  %v1158_v37 = vrot.slane %v5057_v13, 2 }
  0xa5   : > { %v1142_v58 = vsel %vm1134_vm3, %v6065_v39, %v6064_v31  ;;  %v6066_v0 = vmov %v6064_v31  ;;  %v5364_v29 = vpack.c.bf16 %v5045_v8, %v5054_v12  ;;  %v5370_v62 = vpack.c.bf16 %v4961_v1, %v4965_v2 }
  0xa6   : > { %3821 = vmatmul.mubr.msk.bf16.gmra.mrb[20].mxu1 %vm691_vm2, %v5254_v22  ;;  %v1144_v60 = vsel %vm1134_vm3, %v6066_v0, %v1143_v32  ;;  %v1152_v63 = vsel %vm1134_vm3, %v1150_v46, %v1151_v11  ;;  %v1154_v28 = vsel %vm1134_vm3, %v1151_v11, %v1153_v44  ;;  %v1160_v32 = vrot.slane %v5069_v24, 2 }
  0xa7   : > { %3824 = vmatprep.mubr.msk.bf16.mxu1 %vm691_vm2, %v5303_v25  ;;  %3981 = vmatmul.mubr.msk.bf16.gmra.mrb[20].mxu0 %vm691_vm2, %v5303_v25  ;;  %v1157_v13 = vsel %vm1134_vm3, %v1155_v41, %v1156_v3  ;;  %v1159_v8 = vsel %vm1134_vm3, %v1156_v3, %v1158_v37  ;;  %v5381_v12 = vpack.c.bf16 %v5080_v45, %v5069_v24  ;;  %v1165_v51 = vrot.slane %v5086_v47, 2  ;;  %v4557_v24 = vld [vmem:[#allocation5 + $0x60] sm:$0xff]  }
  0xa8   : > { %3984 = vmatprep.mubr.msk.bf16.mxu0 %vm691_vm2, %v5307_v48  ;;  %v5384_v9 = vpack.c.bf16 %v1144_v60, %v1142_v58  ;;  %v5386_v38 = vpack.c.bf16 %v1159_v8, %v1157_v13  ;;  %v1161_v46 = vrot.slane %v5080_v45, 2  ;;  %v1166_v11 = vrot.slane %v5092_v55, 2  ;;  %v4554_v45 = vld [vmem:[#allocation5 + $0xe0] sm:$0xff]  }
  0xa9   : > { %v5390_v61 = vpack.c.bf16 %v1154_v28, %v1152_v63  ;;  %v1168_v44 = vrot.slane %v5095_v56, 2  ;;  %v5395_v31 = vpack.c.bf16 %v5092_v55, %v5086_v47  ;;  %v1170_v39 = vrot.slane %v5115_v19, 2 }
  0xaa   : > { %v1167_v41 = vsel %vm1134_vm3, %v1165_v51, %v1166_v11  ;;  %v1171_v58 = vrot.slane %v5122_v27, 2  ;;  %v1173_v0 = vrot.slane %v5125_v33, 2  ;;  %v5403_v60 = vpack.c.bf16 %v5122_v27, %v5115_v19 }
  0xab   : > { %v1169_v3 = vsel %vm1134_vm3, %v1166_v11, %v1168_v44  ;;  %v1175_v56 = vrot.slane %v5136_v54, 2  ;;  %v1176_v37 = vrot.slane %v5142_v4, 2  ;;  %v1178_v47 = vrot.slane %v5145_v57, 2 }
  0xac   : > { %v5411_v55 = vpack.c.bf16 %v1169_v3, %v1167_v41  ;;  %v1172_v63 = vsel %vm1134_vm3, %v1170_v39, %v1171_v58  ;;  %v1174_v33 = vsel %vm1134_vm3, %v1171_v58, %v1173_v0  ;;  %v5417_v19 = vpack.c.bf16 %v5142_v4, %v5136_v54 }
  0xad   : > { %v5421_v27 = vpack.c.bf16 %v1174_v33, %v1172_v63  ;;  %v1177_v57 = vsel %vm1134_vm3, %v1175_v56, %v1176_v37  ;;  %v1179_v28 = vsel %vm1134_vm3, %v1176_v37, %v1178_v47  ;;  %v1180_v13 = vrot.slane %v5159_v15, 2 }
  0xae   : > { %3825 = vmatmul.mubr.msk.bf16.gmra.mrb[24].mxu1 %vm691_vm2, %v5307_v48  ;;  %v5428_v8 = vpack.c.bf16 %v1179_v28, %v1177_v57  ;;  %v1181_v51 = vrot.slane %v5152_v17, 2  ;;  %v1183_v54 = vrot.slane %v5162_v21, 2  ;;  %v5434_v4 = vpack.c.bf16 %v5152_v17, %v5159_v15 }
  0xaf   : > { %3828 = vmatprep.mubr.msk.bf16.mxu1 %vm691_vm2, %v5294_v7  ;;  %3985 = vmatmul.mubr.msk.bf16.gmra.mrb[24].mxu0 %vm691_vm2, %v5294_v7  ;;  %v1185_v11 = vrot.slane %v5183_v26, 2  ;;  %v1186_v44 = vrot.slane %v5180_v36, 2  ;;  %v1188_v39 = vrot.slane %v5186_v34, 2  ;;  %v5443_v41 = vpack.c.bf16 %v5180_v36, %v5183_v26 }
  0xb0   : > { %3988 = vmatprep.mubr.msk.bf16.mxu0 %vm691_vm2, %v5316_v30  ;;  %v1182_v58 = vsel %vm1134_vm3, %v1180_v13, %v1181_v51  ;;  %v1184_v21 = vsel %vm1134_vm3, %v1181_v51, %v1183_v54  ;;  %v1190_v17 = vrot.slane %v5206_v18, 2  ;;  %v1191_v15 = vrot.slane %v5203_v40, 2 }
  0xb1   : > { %v5449_v0 = vpack.c.bf16 %v1184_v21, %v1182_v58  ;;  %v1187_v3 = vsel %vm1134_vm3, %v1185_v11, %v1186_v44  ;;  %v1189_v56 = vsel %vm1134_vm3, %v1186_v44, %v1188_v39  ;;  %v1193_v34 = vrot.slane %v5209_v20, 2  ;;  %v6067_v44 = vld [vmem:[#allocation27_spill] sm:$0xff] }
  0xb2   : > { %v5454_v37 = vpack.c.bf16 %v1189_v56, %v1187_v3  ;;  %v1192_v26 = vsel %vm1134_vm3, %v1190_v17, %v1191_v15  ;;  %v5459_v36 = vpack.c.bf16 %v5203_v40, %v5206_v18  ;;  %v1195_v47 = vrot.slane %v5223_v53, 2  ;;  %v6069_v56 = vld [vmem:[#allocation29_spill] sm:$0xff] }
  0xb3   : > { %v1194_v63 = vsel %vm1134_vm3, %v1191_v15, %v1193_v34  ;;  %v1196_v33 = vrot.slane %v5220_v6, 2  ;;  %v1198_v57 = vrot.slane %v5226_v14, 2  ;;  %v5467_v28 = vpack.c.bf16 %v5220_v6, %v5223_v53 }
  0xb4   : > { %v5471_v20 = vpack.c.bf16 %v1194_v63, %v1192_v26  ;;  %v1200_v40 = vrot.slane %v5243_v35, 2  ;;  %v1201_v18 = vrot.slane %v5240_v49, 2  ;;  %v1203_v13 = vrot.slane %v5250_v50, 2 }
  0xb5   : > { %v1197_v14 = vsel %vm1134_vm3, %v1195_v47, %v1196_v33  ;;  %v1199_v51 = vsel %vm1134_vm3, %v1196_v33, %v1198_v57  ;;  %v5482_v6 = vpack.c.bf16 %v5240_v49, %v5243_v35  ;;  %v1205_v53 = vrot.slane %v5265_v16, 2  ;;  %v6068_v49 = vld [vmem:[#allocation28_spill] sm:$0xff]  ;;  %v6070_v33 = vld [vmem:[#allocation30_spill] sm:$0xff] }
  0xb6   : > { %3829 = vmatmul.mubr.msk.bf16.gmra.mrb[28].mxu1 %vm691_vm2, %v5316_v30  ;;  %v5487_v54 = vpack.c.bf16 %v1199_v51, %v1197_v14  ;;  %v1202_v50 = vsel %vm1134_vm3, %v1200_v40, %v1201_v18  ;;  %v1204_v11 = vsel %vm1134_vm3, %v1201_v18, %v1203_v13  ;;  %v1206_v39 = vrot.slane %v6067_v44, 2  ;;  %v4551_v13 = vld [vmem:[#allocation5 + $0x48] sm:$0xff]  }
  0xb7   : > { %3840 = vmatprep.mubr.msk.bf16.mxu1 %vm691_vm2, %v5370_v62  ;;  %3989 = vmatmul.mubr.msk.bf16.gmra.mrb[28].mxu0 %vm691_vm2, %v5343_v10  ;;  %v5494_v58 = vpack.c.bf16 %v1204_v11, %v1202_v50  ;;  %v1208_v35 = vrot.slane %v6068_v49, 2  ;;  %v5499_v21 = vpack.c.bf16 %v6067_v44, %v5265_v16  ;;  %v1210_v17 = vrot.slane %v5281_v52, 2  ;;  %v6071_v16 = vld [vmem:[#allocation31_spill] sm:$0xff]  ;;  %v6072_v44 = vld [vmem:[#allocation14_spill] sm:$0xff] }
  0xb8   : > { %4000 = vmatprep.mubr.msk.bf16.mxu0 %vm691_vm2, %v5384_v9  ;;  %v1207_v15 = vsel %vm1134_vm3, %v1205_v53, %v1206_v39  ;;  %v1211_v3 = vrot.slane %v5278_v42, 2  ;;  %v1213_v34 = vrot.slane %v6069_v56, 2  ;;  %v5507_v26 = vpack.c.bf16 %v5278_v42, %v5281_v52 }
  0xb9   : > { %v1209_v47 = vsel %vm1134_vm3, %v1206_v39, %v1208_v35  ;;  %v2006_v63 = vrot.slane %v5298_v5, 2  ;;  %v2007_v57 = vrot.slane %v6070_v33, 2  ;;  %v2009_v40 = vrot.slane %v6071_v16, 2  ;;  %v6073_v39 = vld [vmem:[#allocation18_spill] sm:$0xff]  ;;  %v4547_v35 = vld [vmem:[#allocation5 + $0xc8] sm:$0xff]  }
  0xba   : > { %v5513_v18 = vpack.c.bf16 %v1209_v47, %v1207_v15  ;;  %v1212_v14 = vsel %vm1134_vm3, %v1210_v17, %v1211_v3  ;;  %v1214_v51 = vsel %vm1134_vm3, %v1211_v3, %v1213_v34  ;;  %v1136_v53 = vrot.slane %v4961_v1, 2  ;;  %v6075_v3 = vld [vmem:[#allocation12_spill] sm:$0xff]  ;;  %v4548_v16 = vld [vmem:[#allocation5 + $0xd0] sm:$0xff]  }
  0xbb   : > { %v5518_v50 = vpack.c.bf16 %v1214_v51, %v1212_v14  ;;  %v2008_v42 = vsel %vm1134_vm3, %v2006_v63, %v2007_v57  ;;  %v2010_v52 = vsel %vm1134_vm3, %v2007_v57, %v2009_v40  ;;  %v5524_v11 = vpack.c.bf16 %v6070_v33, %v5298_v5  ;;  %v6077_v5 = vld [vmem:[#allocation23_spill] sm:$0xff]  ;;  %v4552_v63 = vld [vmem:[#allocation5 + $0x50] sm:$0xff]   ;;  %v6078_v33 = vld [vmem:[#allocation21_spill] sm:$0xff] }
  0xbc   : > { %v1163_v49 = vrot.slane %v6073_v39, 2  ;;  %v5529_v17 = vpack.c.bf16 %v2010_v52, %v2008_v42  ;;  %v6074_v1 = vrot.slane %v4965_v2, 2  ;;  %v6076_v56 = vrot.slane %v6075_v3, 2  ;;  %v4553_v40 = vld [vmem:[#allocation5 + $0x58] sm:$0xff]   ;;  %v4562_v52 = vld [vmem:[#allocation5 + $0x100] sm:$0xff]   ;;  %v6087_v3 = vld [vmem:[#allocation26_spill] sm:$0xff] }
  0xbd   : > { %v1162_v2 = vsel %vm1134_vm3, %v1160_v32, %v1161_v46  ;;  %v4550_v51 = vld [vmem:[#allocation5 + $0xd8] sm:$0xff]   ;;  %v4559_v32 = vld [vmem:[#allocation5 + $0x68] sm:$0xff]  }
  0xbe   : > { %3841 = vmatmul.mubr.msk.bf16.vlgmr.msra.gmra.mrb[0].mxu1 %vm691_vm2, %v6072_v44  ;;  %v1137_v15 = vsel %vm1134_vm3, %v6074_v1, %v1136_v53  ;;  %v1139_v34 = vsel %vm1134_vm3, %v1136_v53, %v6076_v56  ;;  %v1164_v57 = vsel %vm1134_vm3, %v1161_v46, %v1163_v49  ;;  %v4555_v46 = vld [vmem:[#allocation5 + $0xe8] sm:$0xff]   ;;  %v4556_v53 = vld [vmem:[#allocation5 + $0xf0] sm:$0xff]   ;;  %v4561_v42 = vld [vmem:[#allocation5 + $0x78] sm:$0xff]  }
  0xbf   : > { %3844 = vmatprep.mubr.msk.bf16.mxu1 %vm691_vm2, %v5332_v23  ;;  %3873 = vmatpush3.bf16.msra.mxu1 %v6077_v5  ;;  %v5540_v47 = vpack.c.bf16 %v1139_v34, %v1137_v15  ;;  %v5555_v14 = vpack.c.bf16 %v1164_v57, %v1162_v2  ;;  %v6079_v39 = vld [vmem:[#allocation15_spill] sm:$0xff]  ;;  %v4563_v49 = vld [vmem:[#allocation5 + $0x108] sm:$0xff]   ;;  %v6085_v15 = vld [vmem:[#allocation24_spill] sm:$0xff] }
  0xc0   : > { %4001 = vmatmul.mubr.msk.bf16.vlgmr.msra.gmra.mrb[0].mxu0 %vm691_vm2, %v5338_v59  ;;  %3874 = vmatprep.subr.bf16.mxu1 %v4551_v13  ;;  %v6081_v1 = vld [vmem:[#allocation17_spill] sm:$0xff] }
  0xc1   : > { %4033 = vmatpush3.bf16.msra.mxu0 %v6078_v33  ;;  %4004 = vmatprep.mubr.msk.bf16.mxu0 %vm691_vm2, %v5390_v61 }
  0xc2   : > { %4034 = vmatprep.subr.bf16.mxu0 %v4547_v35 }
  0xc3   : > { %3875 = vmatpush3.bf16.msra.mxu1 %v4551_v13  ;;  %v4560_v13 = vld [vmem:[#allocation5 + $0x70] sm:$0xff]  }
  0xc4   : > { %3876 = vmatprep.subr.bf16.mxu1 %v4552_v63 }
  0xc5   : > { %4035 = vmatpush3.bf16.msra.mxu0 %v4547_v35  ;;  %v6080_v35 = vld [vmem:[#allocation16_spill] sm:$0xff] }
  0xc6   : > { %3845 = vmatmul.mubr.msk.bf16.gmra.mrb[4].mxu1 %vm691_vm2, %v5352_v43  ;;  %4036 = vmatprep.subr.bf16.mxu0 %v4548_v16 }
  0xc7   : > { %3848 = vmatprep.mubr.msk.bf16.mxu1 %vm691_vm2, %v5364_v29  ;;  %3877 = vmatpush3.bf16.msra.mxu1 %v4552_v63 }
  0xc8   : > { %4005 = vmatmul.mubr.msk.bf16.gmra.mrb[4].mxu0 %vm691_vm2, %v5386_v38  ;;  %3878 = vmatprep.subr.bf16.mxu1 %v4553_v40 }
  0xc9   : > { %4008 = vmatprep.mubr.msk.bf16.mxu0 %vm691_vm2, %v5555_v14  ;;  %4037 = vmatpush3.bf16.msra.mxu0 %v4548_v16 }
  0xca   : > { %4038 = vmatprep.subr.bf16.mxu0 %v4550_v51 }
  0xcb   : > { %3879 = vmatpush3.bf16.msra.mxu1 %v4553_v40 }
  0xcc   : > { %3912 = vmatprep.subr.bf16.mxu1 %v4557_v24 }
  0xcd   : > { %4039 = vmatpush3.bf16.msra.mxu0 %v4550_v51  ;;  %v5818_v51 = vld [vmem:[%s6001_s2] ss:$0 sm:$0xff] }
  0xce   : > { %3849 = vmatmul.mubr.msk.bf16.gmra.mrb[8].mxu1 %vm691_vm2, %v5381_v12  ;;  %4072 = vmatprep.subr.bf16.mxu0 %v4554_v45 }
  0xcf   : > { %3852 = vmatprep.mubr.msk.bf16.mxu1 %vm691_vm2, %v5395_v31 }
  0xd0   : > { %4009 = vmatmul.mubr.msk.bf16.gmra.mrb[8].mxu0 %vm691_vm2, %v5411_v55 }
  0xd1   : > { %4012 = vmatprep.mubr.msk.bf16.mxu0 %vm691_vm2, %v5421_v27 }
  0xd6   : > { %3853 = vmatmul.mubr.msk.bf16.gmra.mrb[12].mxu1 %vm691_vm2, %v5403_v60 }
  0xd7   : > { %3856 = vmatprep.mubr.msk.bf16.mxu1 %vm691_vm2, %v5417_v19 }
  0xd8   : > { %4013 = vmatmul.mubr.msk.bf16.gmra.mrb[12].mxu0 %vm691_vm2, %v5428_v8 }
  0xd9   : > { %4016 = vmatprep.mubr.msk.bf16.mxu0 %vm691_vm2, %v5449_v0 }
  0xde   : > { %3857 = vmatmul.mubr.msk.bf16.gmra.mrb[16].mxu1 %vm691_vm2, %v5434_v4 }
  0xdf   : > { %3860 = vmatprep.mubr.msk.bf16.mxu1 %vm691_vm2, %v5443_v41 }
  0xe0   : > { %4017 = vmatmul.mubr.msk.bf16.gmra.mrb[16].mxu0 %vm691_vm2, %v5454_v37 }
  0xe1   : > { %4020 = vmatprep.mubr.msk.bf16.mxu0 %vm691_vm2, %v5471_v20 }
  0xe6   : > { %3861 = vmatmul.mubr.msk.bf16.gmra.mrb[20].mxu1 %vm691_vm2, %v5459_v36 }
  0xe7   : > { %3864 = vmatprep.mubr.msk.bf16.mxu1 %vm691_vm2, %v5467_v28 }
  0xe8   : > { %4021 = vmatmul.mubr.msk.bf16.gmra.mrb[20].mxu0 %vm691_vm2, %v5487_v54 }
  0xe9   : > { %4024 = vmatprep.mubr.msk.bf16.mxu0 %vm691_vm2, %v5494_v58 }
  0xee   : > { %3865 = vmatmul.mubr.msk.bf16.gmra.mrb[24].mxu1 %vm691_vm2, %v5482_v6 }
  0xef   : > { %3868 = vmatprep.mubr.msk.bf16.mxu1 %vm691_vm2, %v5499_v21 }
  0xf0   : > { %4025 = vmatmul.mubr.msk.bf16.gmra.mrb[24].mxu0 %vm691_vm2, %v5513_v18 }
  0xf1   : > { %4028 = vmatprep.mubr.msk.bf16.mxu0 %vm691_vm2, %v5518_v50 }
  0xf6   : > { %3869 = vmatmul.mubr.msk.bf16.gmra.mrb[28].mxu1 %vm691_vm2, %v5507_v26 }
  0xf7   : > { %3880 = vmatprep.mubr.msk.bf16.mxu1 %vm691_vm2, %v5540_v47 }
  0xf8   : > { %4029 = vmatmul.mubr.msk.bf16.gmra.mrb[28].mxu0 %vm691_vm2, %v5529_v17 }
  0xf9   : > { %4040 = vmatprep.mubr.msk.bf16.mxu0 %vm691_vm2, %v5332_v23 }
  0xfe   : > { %3881 = vmatmul.mubr.msk.bf16.vlgmr.msra.gmra.mrb[0].mxu1 %vm691_vm2, %v5384_v9  ;;  %v4558_v9 = vld [vmem:[#allocation5 + $0xf8] sm:$0xff]  }
  0xff   : > { %3884 = vmatprep.mubr.msk.bf16.mxu1 %vm691_vm2, %v5338_v59  ;;  %3913 = vmatpush3.bf16.msra.mxu1 %v4557_v24 }
 0x100   : > { %4041 = vmatmul.mubr.msk.bf16.vlgmr.msra.gmra.mrb[0].mxu0 %vm691_vm2, %v5352_v43  ;;  %3914 = vmatprep.subr.bf16.mxu1 %v4559_v32 }
 0x101   : > { %4073 = vmatpush3.bf16.msra.mxu0 %v4554_v45  ;;  %4044 = vmatprep.mubr.msk.bf16.mxu0 %vm691_vm2, %v5364_v29 }
 0x102   : > { %4074 = vmatprep.subr.bf16.mxu0 %v4555_v46 }
 0x103   : > { %3915 = vmatpush3.bf16.msra.mxu1 %v4559_v32 }
 0x104   : > { %3916 = vmatprep.subr.bf16.mxu1 %v4560_v13 }
 0x105   : > { %4075 = vmatpush3.bf16.msra.mxu0 %v4555_v46 }
 0x106   : > { %3885 = vmatmul.mubr.msk.bf16.gmra.mrb[4].mxu1 %vm691_vm2, %v5390_v61  ;;  %4076 = vmatprep.subr.bf16.mxu0 %v4556_v53 }
 0x107   : > { %3888 = vmatprep.mubr.msk.bf16.mxu1 %vm691_vm2, %v5386_v38  ;;  %3917 = vmatpush3.bf16.msra.mxu1 %v4560_v13 }
 0x108   : > { %4045 = vmatmul.mubr.msk.bf16.gmra.mrb[4].mxu0 %vm691_vm2, %v5381_v12  ;;  %3918 = vmatprep.subr.bf16.mxu1 %v4561_v42 }
 0x109   : > { %4048 = vmatprep.mubr.msk.bf16.mxu0 %vm691_vm2, %v5395_v31  ;;  %4077 = vmatpush3.bf16.msra.mxu0 %v4556_v53 }
 0x10a   : > { %4078 = vmatprep.subr.bf16.mxu0 %v4558_v9 }
 0x10b   : > { %3919 = vmatpush3.bf16.msra.mxu1 %v4561_v42 }
 0x10d   : > { %4079 = vmatpush3.bf16.msra.mxu0 %v4558_v9 }
 0x10e   : > { %3889 = vmatmul.mubr.msk.bf16.gmra.mrb[8].mxu1 %vm691_vm2, %v5555_v14  ;;  %4112 = vmatprep.subr.bf16.mxu0 %v4562_v52 }
 0x10f   : > { %3892 = vmatprep.mubr.msk.bf16.mxu1 %vm691_vm2, %v5411_v55 }
 0x110   : > { %4049 = vmatmul.mubr.msk.bf16.gmra.mrb[8].mxu0 %vm691_vm2, %v5403_v60 }
 0x111   : > { %4052 = vmatprep.mubr.msk.bf16.mxu0 %vm691_vm2, %v5417_v19 }
 0x116   : > { %3893 = vmatmul.mubr.msk.bf16.gmra.mrb[12].mxu1 %vm691_vm2, %v5421_v27 }
 0x117   : > { %3896 = vmatprep.mubr.msk.bf16.mxu1 %vm691_vm2, %v5428_v8 }
 0x118   : > { %4053 = vmatmul.mubr.msk.bf16.gmra.mrb[12].mxu0 %vm691_vm2, %v5434_v4 }
 0x119   : > { %4056 = vmatprep.mubr.msk.bf16.mxu0 %vm691_vm2, %v5443_v41 }
 0x11e   : > { %3897 = vmatmul.mubr.msk.bf16.gmra.mrb[16].mxu1 %vm691_vm2, %v5449_v0 }
 0x11f   : > { %3900 = vmatprep.mubr.msk.bf16.mxu1 %vm691_vm2, %v5454_v37 }
 0x120   : > { %4057 = vmatmul.mubr.msk.bf16.gmra.mrb[16].mxu0 %vm691_vm2, %v5459_v36 }
 0x121   : > { %4060 = vmatprep.mubr.msk.bf16.mxu0 %vm691_vm2, %v5467_v28 }
 0x126   : > { %3901 = vmatmul.mubr.msk.bf16.gmra.mrb[20].mxu1 %vm691_vm2, %v5471_v20 }
 0x127   : > { %3904 = vmatprep.mubr.msk.bf16.mxu1 %vm691_vm2, %v5487_v54 }
 0x128   : > { %4061 = vmatmul.mubr.msk.bf16.gmra.mrb[20].mxu0 %vm691_vm2, %v5482_v6 }
 0x129   : > { %4064 = vmatprep.mubr.msk.bf16.mxu0 %vm691_vm2, %v5499_v21 }
 0x12e   : > { %3905 = vmatmul.mubr.msk.bf16.gmra.mrb[24].mxu1 %vm691_vm2, %v5494_v58 }
 0x12f   : > { %3908 = vmatprep.mubr.msk.bf16.mxu1 %vm691_vm2, %v5513_v18 }
 0x130   : > { %4065 = vmatmul.mubr.msk.bf16.gmra.mrb[24].mxu0 %vm691_vm2, %v5507_v26 }
 0x131   : > { %4068 = vmatprep.mubr.msk.bf16.mxu0 %vm691_vm2, %v5524_v11 }
 0x136   : > { %3909 = vmatmul.mubr.msk.bf16.gmra.mrb[28].mxu1 %vm691_vm2, %v5518_v50 }
 0x137   : > { %3920 = vmatprep.mubr.msk.bf16.mxu1 %vm691_vm2, %v6072_v44  ;;  %v4564_v44 = vld [vmem:[#allocation5 + $0x110] sm:$0xff]  }
 0x138   : > { %4069 = vmatmul.mubr.msk.bf16.gmra.mrb[28].mxu0 %vm691_vm2, %v5370_v62  ;;  %v4565_v62 = vld [vmem:[#allocation5 + $0x118] sm:$0xff]  }
 0x139   : > { %4080 = vmatprep.mubr.msk.bf16.mxu0 %vm691_vm2, %v6079_v39 }
 0x13e   : > { %3921 = vmatmul.mubr.msk.bf16.vlgmr.msra.gmra.mrb[0].mxu1 %vm691_vm2, %v5332_v23  ;;  %v6082_v23 = vld [vmem:[#allocation19_spill] sm:$0xff] }
 0x13f   : > { %3924 = vmatprep.mubr.msk.bf16.mxu1 %vm691_vm2, %v5352_v43  ;;  %v6083_v43 = vld [vmem:[#allocation20_spill] sm:$0xff] }
 0x140   : > { %4081 = vmatmul.mubr.msk.bf16.vlgmr.msra.gmra.mrb[0].mxu0 %vm691_vm2, %v6080_v35 }
 0x141   : > { %4113 = vmatpush3.bf16.msra.mxu0 %v4562_v52  ;;  %4084 = vmatprep.mubr.msk.bf16.mxu0 %vm691_vm2, %v6081_v1 }
 0x142   : > { %4114 = vmatprep.subr.bf16.mxu0 %v4563_v49 }
 0x145   : > { %4115 = vmatpush3.bf16.msra.mxu0 %v4563_v49 }
 0x146   : > { %3925 = vmatmul.mubr.msk.bf16.gmra.mrb[4].mxu1 %vm691_vm2, %v5364_v29  ;;  %4116 = vmatprep.subr.bf16.mxu0 %v4564_v44  ;;  %v6084_v29 = vld [vmem:[#allocation22_spill] sm:$0xff] }
 0x147   : > { %3928 = vmatprep.mubr.msk.bf16.mxu1 %vm691_vm2, %v5381_v12  ;;  %v6086_v12 = vld [vmem:[#allocation25_spill] sm:$0xff] }
 0x148   : > { %4085 = vmatmul.mubr.msk.bf16.gmra.mrb[4].mxu0 %vm691_vm2, %v6082_v23 }
 0x149   : > { %4088 = vmatprep.mubr.msk.bf16.mxu0 %vm691_vm2, %v6083_v43  ;;  %4117 = vmatpush3.bf16.msra.mxu0 %v4564_v44 }
 0x14a   : > { %4118 = vmatprep.subr.bf16.mxu0 %v4565_v62 }
 0x14d   : > { %4119 = vmatpush3.bf16.msra.mxu0 %v4565_v62 }
 0x14e   : > { %3929 = vmatmul.mubr.msk.bf16.gmra.mrb[8].mxu1 %vm691_vm2, %v5395_v31 }
 0x14f   : > { %3932 = vmatprep.mubr.msk.bf16.mxu1 %vm691_vm2, %v5403_v60 }
 0x150   : > { %4089 = vmatmul.mubr.msk.bf16.gmra.mrb[8].mxu0 %vm691_vm2, %v6084_v29 }
 0x151   : > { %4092 = vmatprep.mubr.msk.bf16.mxu0 %vm691_vm2, %v6085_v15 }
 0x156   : > { %3933 = vmatmul.mubr.msk.bf16.gmra.mrb[12].mxu1 %vm691_vm2, %v5417_v19 }
 0x157   : > { %3936 = vmatprep.mubr.msk.bf16.mxu1 %vm691_vm2, %v5434_v4 }
 0x158   : > { %4093 = vmatmul.mubr.msk.bf16.gmra.mrb[12].mxu0 %vm691_vm2, %v6086_v12 }
 0x159   : > { %4096 = vmatprep.mubr.msk.bf16.mxu0 %vm691_vm2, %v6087_v3 }
 0x15e   : > { %3937 = vmatmul.mubr.msk.bf16.gmra.mrb[16].mxu1 %vm691_vm2, %v5443_v41 }
 0x15f   : > { %3940 = vmatprep.mubr.msk.bf16.mxu1 %vm691_vm2, %v5459_v36 }
 0x160   : > { %4097 = vmatmul.mubr.msk.bf16.gmra.mrb[16].mxu0 %vm691_vm2, %v5254_v22  ;;  %v6088_v22 = vld [vmem:[#allocation13_spill] sm:$0xff] }
 0x161   : > { %4100 = vmatprep.mubr.msk.bf16.mxu0 %vm691_vm2, %v5303_v25  ;;  %v4568_v25 = vld [vmem:[#allocation7 + $0x10] sm:$0xff]  }
 0x166   : > { %3941 = vmatmul.mubr.msk.bf16.gmra.mrb[20].mxu1 %vm691_vm2, %v5467_v28 }
 0x167   : > { %3944 = vmatprep.mubr.msk.bf16.mxu1 %vm691_vm2, %v5482_v6 }
 0x168   : > { %4101 = vmatmul.mubr.msk.bf16.gmra.mrb[20].mxu0 %vm691_vm2, %v5307_v48  ;;  %v4566_v48 = vld [vmem:[#allocation7] sm:$0xff]  }
 0x169   : > { %4104 = vmatprep.mubr.msk.bf16.mxu0 %vm691_vm2, %v5294_v7  ;;  %4152 = vmatprep.subr.bf16.mxu1 %v4566_v48  ;;  %v4567_v7 = vld [vmem:[#allocation7 + $0x8] sm:$0xff]  }
 0x16a   : > { %4153 = vmatpush3.bf16.msra.mxu1 %v4566_v48 }
 0x16b   : > { %4154 = vmatprep.subr.bf16.mxu1 %v4567_v7 }
 0x16e   : > { %3945 = vmatmul.mubr.msk.bf16.gmra.mrb[24].mxu1 %vm691_vm2, %v5499_v21 }
 0x16f   : > { %3948 = vmatprep.mubr.msk.bf16.mxu1 %vm691_vm2, %v5507_v26  ;;  %4155 = vmatpush3.bf16.msra.mxu1 %v4567_v7 }
 0x170   : > { %4105 = vmatmul.mubr.msk.bf16.gmra.mrb[24].mxu0 %vm691_vm2, %v5316_v30  ;;  %4156 = vmatprep.subr.bf16.mxu1 %v4568_v25  ;;  %v4570_v30 = vld [vmem:[#allocation7 + $0x20] sm:$0xff]  }
 0x171   : > { %4108 = vmatprep.mubr.msk.bf16.mxu0 %vm691_vm2, %v5343_v10  ;;  %v4571_v10 = vld [vmem:[#allocation7 + $0x28] sm:$0xff]  }
 0x173   : > { %4157 = vmatpush3.bf16.msra.mxu1 %v4568_v25 }
 0x176   : > { %3949 = vmatmul.mubr.msk.bf16.gmra.mrb[28].mxu1 %vm691_vm2, %v5524_v11 }
 0x178   : > { %4109 = vmatmul.mubr.msk.bf16.gmra.mrb[28].mxu0 %vm691_vm2, %v6088_v22 }
 0x179   : > { %4120 = vmatprep.mubr.msk.bf16.mxu0 %vm691_vm2, %v5338_v59  ;;  %v4569_v59 = vld [vmem:[#allocation7 + $0x18] sm:$0xff]  }
 0x17a   : > { %4158 = vmatprep.subr.bf16.mxu1 %v4569_v59 }
 0x17b   : > { %4159 = vmatpush3.bf16.msra.mxu1 %v4569_v59 }
 0x17c   : > { %4160 = vmatprep.subr.bf16.mxu1 %v4570_v30 }
 0x17f   : > { %4161 = vmatpush3.bf16.msra.mxu1 %v4570_v30 }
 0x180   : > { %4121 = vmatmul.mubr.msk.bf16.vlgmr.msra.gmra.mrb[0].mxu0 %vm691_vm2, %v5390_v61  ;;  %4162 = vmatprep.subr.bf16.mxu1 %v4571_v10  ;;  %v4573_v61 = vld [vmem:[#allocation7 + $0x38] sm:$0xff]  }
 0x181   : > { %4124 = vmatprep.mubr.msk.bf16.mxu0 %vm691_vm2, %v5386_v38  ;;  %v4572_v38 = vld [vmem:[#allocation7 + $0x30] sm:$0xff]  }
 0x183   : > { %4163 = vmatpush3.bf16.msra.mxu1 %v4571_v10 }
 0x184   : > { %4164 = vmatprep.subr.bf16.mxu1 %v4572_v38 }
 0x187   : > { %4165 = vmatpush3.bf16.msra.mxu1 %v4572_v38 }
 0x188   : > { %4125 = vmatmul.mubr.msk.bf16.gmra.mrb[4].mxu0 %vm691_vm2, %v5555_v14  ;;  %4166 = vmatprep.subr.bf16.mxu1 %v4573_v61 }
 0x189   : > { %4128 = vmatprep.mubr.msk.bf16.mxu0 %vm691_vm2, %v5411_v55 }
 0x18b   : > { %4167 = vmatpush3.bf16.msra.mxu1 %v4573_v61 }
 0x190   : > { %4129 = vmatmul.mubr.msk.bf16.gmra.mrb[8].mxu0 %vm691_vm2, %v5421_v27 }
 0x191   : > { %4132 = vmatprep.mubr.msk.bf16.mxu0 %vm691_vm2, %v5428_v8 }
 0x198   : > { %4133 = vmatmul.mubr.msk.bf16.gmra.mrb[12].mxu0 %vm691_vm2, %v5449_v0 }
 0x199   : > { %4136 = vmatprep.mubr.msk.bf16.mxu0 %vm691_vm2, %v5454_v37 }
 0x1a0   : > { %4137 = vmatmul.mubr.msk.bf16.gmra.mrb[16].mxu0 %vm691_vm2, %v5471_v20 }
 0x1a1   : > { %4140 = vmatprep.mubr.msk.bf16.mxu0 %vm691_vm2, %v5487_v54 }
 0x1a8   : > { %4141 = vmatmul.mubr.msk.bf16.gmra.mrb[20].mxu0 %vm691_vm2, %v5494_v58 }
 0x1a9   : > { %4144 = vmatprep.mubr.msk.bf16.mxu0 %vm691_vm2, %v5513_v18 }
 0x1b0   : > { %4145 = vmatmul.mubr.msk.bf16.gmra.mrb[24].mxu0 %vm691_vm2, %v5518_v50 }
 0x1b1   : > { %4148 = vmatprep.mubr.msk.bf16.mxu0 %vm691_vm2, %v5529_v17 }
 0x1b8   : > { %4149 = vmatmul.mubr.msk.bf16.gmra.mrb[28].mxu0 %vm691_vm2, %v5540_v47 }
 0x211   : > { %v3922_v31 = vpop.f32.mrb[0].mxu1 }
 0x212   : > { %v1608_v60 = vpop.f32.mrb[1].mxu1 }
 0x213   : > { %v3923_v55 = vpop.f32.mrb[2].mxu1 }
 0x214   : > { %v1611_v19 = vpop.f32.mrb[3].mxu1 }
 0x219   : > { %v3926_v27 = vpop.f32.mrb[4].mxu1 }
 0x21a   : > { %v1624_v8 = vpop.f32.mrb[5].mxu1 }
 0x21b   : > { %v3927_v4 = vpop.f32.mrb[6].mxu1 }
 0x21c   : > { %v1627_v41 = vpop.f32.mrb[7].mxu1 }
 0x221   : > { %v3930_v0 = vpop.f32.mrb[8].mxu1 }
 0x222   : > { %v5769_v37 = vpop.f32.mrb[9].mxu1 }
 0x223   : > { %v5771_v36 = vpop.f32.mrb[10].mxu1 }
 0x224   : > { %v5773_v28 = vpop.f32.mrb[11].mxu1 }
 0x229   : > { %v5775_v20 = vpop.f32.mrb[12].mxu1 }
 0x22a   : > { %v5777_v6 = vpop.f32.mrb[13].mxu1 }
 0x22b   : > { %v5779_v54 = vpop.f32.mrb[14].mxu1 }
 0x22c   : > { %v5781_v58 = vpop.f32.mrb[15].mxu1 }
 0x231   : > { %v5783_v21 = vpop.f32.mrb[16].mxu1 }
 0x232   : > { %v5785_v26 = vpop.f32.mrb[17].mxu1 }
 0x233   : > { %v5787_v18 = vpop.f32.mrb[18].mxu1 }
 0x234   : > { %v5789_v50 = vpop.f32.mrb[19].mxu1 }
 0x239   : > { %v5791_v11 = vpop.f32.mrb[20].mxu1 }
 0x23a   : > { %v5793_v17 = vpop.f32.mrb[21].mxu1 }
 0x23b   : > { %v5795_v56 = vpop.f32.mrb[22].mxu1 }
 0x23c   : > { %v5797_v34 = vpop.f32.mrb[23].mxu1 }
 0x241   : > { %v5799_v5 = vpop.f32.mrb[24].mxu1 }
 0x242   : > { %v5801_v47 = vpop.f32.mrb[25].mxu1 }
 0x243   : > { %v5803_v63 = vpop.f32.mrb[26].mxu1 }
 0x244   : > { %v5805_v33 = vpop.f32.mrb[27].mxu1 }
 0x249   : > { %v5807_v2 = vpop.f32.mrb[28].mxu1 }
 0x24a   : > { %v5809_v57 = vpop.f32.mrb[29].mxu1 }
 0x24b   : > { %v5811_v16 = vpop.f32.mrb[30].mxu1 }
 0x24c   : > { %v5813_v40 = vpop.f32.mrb[31].mxu1 }
 0x253   : > { %v4122_v14 = vpop.f32.mrb[0].mxu0 }
 0x254   : > { %v4200_v24 = vadd.f32 %v4122_v14, %v3922_v31  ;;  %v2762_v45 = vpop.f32.mrb[1].mxu0 }
 0x255   : > { %v4201_v32 = vadd.f32 %v2762_v45, %v1608_v60  ;;  %v4123_v46 = vpop.f32.mrb[2].mxu0 }
 0x256   : > { %v2930_v13 = vadd.f32 %v4200_v24, %v5818_v51  ;;  %v4202_v53 = vadd.f32 %v4123_v46, %v3923_v55  ;;  %v2765_v42 = vpop.f32.mrb[3].mxu0 }
 0x257   : > { %v2928_v9 = vadd.f32 %v4201_v32, %v5818_v51  ;;  %v4203_v52 = vadd.f32 %v2765_v42, %v1611_v19 }
 0x258   : > { %v2931_v39 = vadd.f32 %v4202_v53, %v5818_v51  ;;  %v2962_v35 = vmax.f32 %v2930_v13, 0.0 }
 0x259   : > { %v2929_v49 = vadd.f32 %v4203_v52, %v5818_v51  ;;  %v2960_v44 = vmax.f32 %v2928_v9, 0.0 }
 0x25a   : > { %v2963_v1 = vmax.f32 %v2931_v39, 0.0 }
 0x25b   : > { %v2961_v62 = vmax.f32 %v2929_v49, 0.0  ;;  %v4126_v23 = vpop.f32.mrb[4].mxu0 }
 0x25c   : > { %v2993_v43 = vpack.c.bf16 %v2963_v1, %v2962_v35  ;;  %v4204_v29 = vadd.f32 %v4126_v23, %v3926_v27  ;;  %v2778_v15 = vpop.f32.mrb[5].mxu0 }
 0x25d   : > { %v4205_v12 = vadd.f32 %v2778_v15, %v1624_v8  ;;  %v4127_v3 = vpop.f32.mrb[6].mxu0  ;;  %v2992_v22 = vpack.c.bf16 %v2961_v62, %v2960_v44 }
 0x25e   : > { %v2934_v48 = vadd.f32 %v4204_v29, %v5818_v51  ;;  %v4206_v7 = vadd.f32 %v4127_v3, %v3927_v4  ;;  %v2781_v25 = vpop.f32.mrb[7].mxu0 }
 0x25f   : > { %v2932_v59 = vadd.f32 %v4205_v12, %v5818_v51  ;;  %v4207_v30 = vadd.f32 %v2781_v25, %v1627_v41  ;;  %4168 = vmatprep.mubr.bf16.mxu1 %v2992_v22 }
 0x260   : > { %v2935_v10 = vadd.f32 %v4206_v7, %v5818_v51  ;;  %4169 = vmatmul.mubr.bf16.vlgmr.msra.gmra.mrb[32].mxu1 %v2993_v43  ;;  %v2966_v61 = vmax.f32 %v2934_v48, 0.0 }
 0x261   : > { %v2933_v38 = vadd.f32 %v4207_v30, %v5818_v51  ;;  %v2964_v60 = vmax.f32 %v2932_v59, 0.0 }
 0x262   : > { %v2967_v31 = vmax.f32 %v2935_v10, 0.0 }
 0x263   : > { %v2965_v55 = vmax.f32 %v2933_v38, 0.0  ;;  %v4130_v19 = vpop.f32.mrb[8].mxu0 }
 0x264   : > { %v4208_v27 = vadd.f32 %v4130_v19, %v3930_v0  ;;  %v2794_v8 = vpop.f32.mrb[9].mxu0  ;;  %v2995_v14 = vpack.c.bf16 %v2967_v31, %v2966_v61 }
 0x265   : > { %v4209_v4 = vadd.f32 %v2794_v8, %v5769_v37  ;;  %v4131_v24 = vpop.f32.mrb[10].mxu0  ;;  %v2994_v45 = vpack.c.bf16 %v2965_v55, %v2964_v60 }
 0x266   : > { %v2938_v41 = vadd.f32 %v4208_v27, %v5818_v51  ;;  %v4210_v32 = vadd.f32 %v4131_v24, %v5771_v36  ;;  %v2797_v46 = vpop.f32.mrb[11].mxu0 }
 0x267   : > { %v2936_v13 = vadd.f32 %v4209_v4, %v5818_v51  ;;  %v4211_v53 = vadd.f32 %v2797_v46, %v5773_v28  ;;  %4172 = vmatprep.mubr.bf16.mxu1 %v2994_v45 }
 0x268   : > { %v2939_v42 = vadd.f32 %v4210_v32, %v5818_v51  ;;  %4173 = vmatmul.mubr.bf16.gmra.mrb[36].mxu1 %v2995_v14  ;;  %v2970_v9 = vmax.f32 %v2938_v41, 0.0 }
 0x269   : > { %v2937_v0 = vadd.f32 %v4211_v53, %v5818_v51  ;;  %v2968_v37 = vmax.f32 %v2936_v13, 0.0 }
 0x26a   : > { %v2971_v52 = vmax.f32 %v2939_v42, 0.0 }
 0x26b   : > { %v2969_v39 = vmax.f32 %v2937_v0, 0.0  ;;  %v4134_v49 = vpop.f32.mrb[12].mxu0 }
 0x26c   : > { %v4212_v35 = vadd.f32 %v4134_v49, %v5775_v20  ;;  %v2810_v1 = vpop.f32.mrb[13].mxu0  ;;  %v2997_v36 = vpack.c.bf16 %v2971_v52, %v2970_v9 }
 0x26d   : > { %v4213_v44 = vadd.f32 %v2810_v1, %v5777_v6  ;;  %v4135_v62 = vpop.f32.mrb[14].mxu0  ;;  %v2996_v23 = vpack.c.bf16 %v2969_v39, %v2968_v37 }
 0x26e   : > { %v2942_v28 = vadd.f32 %v4212_v35, %v5818_v51  ;;  %v4214_v43 = vadd.f32 %v4135_v62, %v5779_v54  ;;  %v2813_v29 = vpop.f32.mrb[15].mxu0 }
 0x26f   : > { %v2940_v15 = vadd.f32 %v4213_v44, %v5818_v51  ;;  %v4215_v12 = vadd.f32 %v2813_v29, %v5781_v58  ;;  %4176 = vmatprep.mubr.bf16.mxu1 %v2996_v23 }
 0x270   : > { %v2943_v3 = vadd.f32 %v4214_v43, %v5818_v51  ;;  %4177 = vmatmul.mubr.bf16.gmra.mrb[40].mxu1 %v2997_v36  ;;  %v2974_v22 = vmax.f32 %v2942_v28, 0.0 }
 0x271   : > { %v2941_v20 = vadd.f32 %v4215_v12, %v5818_v51  ;;  %v2972_v6 = vmax.f32 %v2940_v15, 0.0 }
 0x272   : > { %v2975_v48 = vmax.f32 %v2943_v3, 0.0 }
 0x273   : > { %v2973_v7 = vmax.f32 %v2941_v20, 0.0  ;;  %v4138_v25 = vpop.f32.mrb[16].mxu0 }
 0x274   : > { %v4216_v59 = vadd.f32 %v4138_v25, %v5783_v21  ;;  %v2826_v30 = vpop.f32.mrb[17].mxu0  ;;  %v2999_v54 = vpack.c.bf16 %v2975_v48, %v2974_v22 }
 0x275   : > { %v4217_v10 = vadd.f32 %v2826_v30, %v5785_v26  ;;  %v4139_v38 = vpop.f32.mrb[18].mxu0  ;;  %v2998_v61 = vpack.c.bf16 %v2973_v7, %v2972_v6 }
 0x276   : > { %v2946_v58 = vadd.f32 %v4216_v59, %v5818_v51  ;;  %v4218_v31 = vadd.f32 %v4139_v38, %v5787_v18  ;;  %v2829_v60 = vpop.f32.mrb[19].mxu0 }
 0x277   : > { %v2944_v55 = vadd.f32 %v4217_v10, %v5818_v51  ;;  %v4219_v19 = vadd.f32 %v2829_v60, %v5789_v50  ;;  %4180 = vmatprep.mubr.bf16.mxu1 %v2998_v61 }
 0x278   : > { %v2947_v27 = vadd.f32 %v4218_v31, %v5818_v51  ;;  %4181 = vmatmul.mubr.bf16.gmra.mrb[44].mxu1 %v2999_v54  ;;  %v2978_v8 = vmax.f32 %v2946_v58, 0.0 }
 0x279   : > { %v2945_v21 = vadd.f32 %v4219_v19, %v5818_v51  ;;  %v2976_v26 = vmax.f32 %v2944_v55, 0.0 }
 0x27a   : > { %v2979_v14 = vmax.f32 %v2947_v27, 0.0 }
 0x27b   : > { %v2977_v4 = vmax.f32 %v2945_v21, 0.0  ;;  %v4142_v24 = vpop.f32.mrb[20].mxu0 }
 0x27c   : > { %v4220_v45 = vadd.f32 %v4142_v24, %v5791_v11  ;;  %v2842_v41 = vpop.f32.mrb[21].mxu0  ;;  %v3001_v18 = vpack.c.bf16 %v2979_v14, %v2978_v8 }
 0x27d   : > { %v4221_v32 = vadd.f32 %v2842_v41, %v5793_v17  ;;  %v4143_v46 = vpop.f32.mrb[22].mxu0  ;;  %v3000_v13 = vpack.c.bf16 %v2977_v4, %v2976_v26 }
 0x27e   : > { %v2950_v50 = vadd.f32 %v4220_v45, %v5818_v51  ;;  %v4222_v53 = vadd.f32 %v4143_v46, %v5795_v56  ;;  %v2845_v42 = vpop.f32.mrb[23].mxu0 }
 0x27f   : > { %v2948_v0 = vadd.f32 %v4221_v32, %v5818_v51  ;;  %v4223_v9 = vadd.f32 %v2845_v42, %v5797_v34  ;;  %4184 = vmatprep.mubr.bf16.mxu1 %v3000_v13 }
 0x280   : > { %v2951_v52 = vadd.f32 %v4222_v53, %v5818_v51  ;;  %4185 = vmatmul.mubr.bf16.gmra.mrb[48].mxu1 %v3001_v18  ;;  %v2982_v37 = vmax.f32 %v2950_v50, 0.0 }
 0x281   : > { %v2949_v11 = vadd.f32 %v4223_v9, %v5818_v51  ;;  %v2980_v17 = vmax.f32 %v2948_v0, 0.0 }
 0x282   : > { %v2983_v39 = vmax.f32 %v2951_v52, 0.0 }
 0x283   : > { %v2981_v49 = vmax.f32 %v2949_v11, 0.0  ;;  %v4146_v35 = vpop.f32.mrb[24].mxu0 }
 0x284   : > { %v4224_v1 = vadd.f32 %v4146_v35, %v5799_v5  ;;  %v2858_v36 = vpop.f32.mrb[25].mxu0  ;;  %v3003_v56 = vpack.c.bf16 %v2983_v39, %v2982_v37 }
 0x285   : > { %v4225_v44 = vadd.f32 %v2858_v36, %v5801_v47  ;;  %v4147_v62 = vpop.f32.mrb[26].mxu0  ;;  %v3002_v23 = vpack.c.bf16 %v2981_v49, %v2980_v17 }
 0x286   : > { %v2954_v34 = vadd.f32 %v4224_v1, %v5818_v51  ;;  %v4226_v28 = vadd.f32 %v4147_v62, %v5803_v63  ;;  %v2861_v43 = vpop.f32.mrb[27].mxu0 }
 0x287   : > { %v2952_v29 = vadd.f32 %v4225_v44, %v5818_v51  ;;  %v4227_v15 = vadd.f32 %v2861_v43, %v5805_v33  ;;  %4188 = vmatprep.mubr.bf16.mxu1 %v3002_v23 }
 0x288   : > { %v2955_v12 = vadd.f32 %v4226_v28, %v5818_v51  ;;  %4189 = vmatmul.mubr.bf16.gmra.mrb[52].mxu1 %v3003_v56  ;;  %v2986_v3 = vmax.f32 %v2954_v34, 0.0 }
 0x289   : > { %v2953_v5 = vadd.f32 %v4227_v15, %v5818_v51  ;;  %v2984_v47 = vmax.f32 %v2952_v29, 0.0 }
 0x28a   : > { %v2987_v20 = vmax.f32 %v2955_v12, 0.0 }
 0x28b   : > { %v2985_v22 = vmax.f32 %v2953_v5, 0.0  ;;  %v4150_v48 = vpop.f32.mrb[28].mxu0 }
 0x28c   : > { %v4228_v6 = vadd.f32 %v4150_v48, %v5807_v2  ;;  %v2874_v7 = vpop.f32.mrb[29].mxu0  ;;  %v3005_v63 = vpack.c.bf16 %v2987_v20, %v2986_v3 }
 0x28d   : > { %v4229_v25 = vadd.f32 %v2874_v7, %v5809_v57  ;;  %v4151_v59 = vpop.f32.mrb[30].mxu0  ;;  %v3004_v30 = vpack.c.bf16 %v2985_v22, %v2984_v47 }
 0x28e   : > { %v2958_v33 = vadd.f32 %v4228_v6, %v5818_v51  ;;  %v4230_v54 = vadd.f32 %v4151_v59, %v5811_v16  ;;  %v2877_v10 = vpop.f32.mrb[31].mxu0  ;;  %v5878_v16 = vld [vmem:[%s6003_s4] ss:$0 sm:$0xff] }
 0x28f   : > { %v2956_v38 = vadd.f32 %v4229_v25, %v5818_v51  ;;  %v4231_v61 = vadd.f32 %v2877_v10, %v5813_v40  ;;  %4192 = vmatprep.mubr.bf16.mxu1 %v3004_v30 }
 0x290   : > { %v2959_v58 = vadd.f32 %v4230_v54, %v5818_v51  ;;  %4193 = vmatmul.mubr.bf16.gmra.mrb[56].mxu1 %v3005_v63  ;;  %v2990_v31 = vmax.f32 %v2958_v33, 0.0 }
 0x291   : > { %v2957_v2 = vadd.f32 %v4231_v61, %v5818_v51  ;;  %v2988_v60 = vmax.f32 %v2956_v38, 0.0 }
 0x292   : > { %v2991_v57 = vmax.f32 %v2959_v58, 0.0 }
 0x293   : > { %v2989_v55 = vmax.f32 %v2957_v2, 0.0 }
 0x294   : > { %v3007_v19 = vpack.c.bf16 %v2991_v57, %v2990_v31 }
 0x295   : > { %v3006_v27 = vpack.c.bf16 %v2989_v55, %v2988_v60 }
 0x297   : > { %4196 = vmatprep.mubr.bf16.mxu1 %v3006_v27 }
 0x298   : > { %4197 = vmatmul.mubr.bf16.gmra.mrb[60].mxu1 %v3007_v19 }
 0x333   : > { %v4170_v40 = vpop.f32.mrb[32].mxu1 }
 0x334   : > { %v3122_v21 = vadd.f32 %v4170_v40, %v5878_v16  ;;  %v3113_v8 = vpop.f32.mrb[33].mxu1 }
 0x335   : > { %v3114_v14 = vadd.f32 %v5878_v16, %v3113_v8  ;;  %v4171_v51 = vpop.f32.mrb[34].mxu1 }
 0x336   : > { %3242 = vst [vmem:[%s5884_s11 + $0x10] sm:$0xff] %v3122_v21  ;;  %v3125_v26 = vadd.f32 %v4171_v51, %v5878_v16  ;;  %v3116_v4 = vpop.f32.mrb[35].mxu1 }
 0x337   : > { %3240 = vst [vmem:[%s5884_s11] sm:$0xff] %v3114_v14  ;;  %v3117_v24 = vadd.f32 %v5878_v16, %v3116_v4 }
 0x338   : > { %3243 = vst [vmem:[%s5884_s11 + $0x18] sm:$0xff] %v3125_v26 }
 0x339   : > { %3241 = vst [vmem:[%s5884_s11 + $0x8] sm:$0xff] %v3117_v24 }
 0x33b   : > { %v4174_v45 = vpop.f32.mrb[36].mxu1 }
 0x33c   : > { %v3138_v41 = vadd.f32 %v4174_v45, %v5878_v16  ;;  %v3129_v18 = vpop.f32.mrb[37].mxu1 }
 0x33d   : > { %v3130_v32 = vadd.f32 %v5878_v16, %v3129_v18  ;;  %v4175_v46 = vpop.f32.mrb[38].mxu1 }
 0x33e   : > { %3246 = vst [vmem:[%s5884_s11 + $0x30] sm:$0xff] %v3138_v41  ;;  %v3141_v13 = vadd.f32 %v4175_v46, %v5878_v16  ;;  %v3132_v50 = vpop.f32.mrb[39].mxu1 }
 0x33f   : > { %3244 = vst [vmem:[%s5884_s11 + $0x20] sm:$0xff] %v3130_v32  ;;  %v3133_v53 = vadd.f32 %v5878_v16, %v3132_v50 }
 0x340   : > { %3247 = vst [vmem:[%s5884_s11 + $0x38] sm:$0xff] %v3141_v13 }
 0x341   : > { %3245 = vst [vmem:[%s5884_s11 + $0x28] sm:$0xff] %v3133_v53 }
 0x343   : > { %v4178_v42 = vpop.f32.mrb[40].mxu1 }
 0x344   : > { %v3154_v0 = vadd.f32 %v4178_v42, %v5878_v16  ;;  %v3145_v9 = vpop.f32.mrb[41].mxu1 }
 0x345   : > { %v3146_v52 = vadd.f32 %v5878_v16, %v3145_v9  ;;  %v4179_v11 = vpop.f32.mrb[42].mxu1 }
 0x346   : > { %3250 = vst [vmem:[%s5884_s11 + $0x50] sm:$0xff] %v3154_v0  ;;  %v3157_v37 = vadd.f32 %v4179_v11, %v5878_v16  ;;  %v3148_v39 = vpop.f32.mrb[43].mxu1 }
 0x347   : > { %3248 = vst [vmem:[%s5884_s11 + $0x40] sm:$0xff] %v3146_v52  ;;  %v3149_v17 = vadd.f32 %v5878_v16, %v3148_v39 }
 0x348   : > { %3251 = vst [vmem:[%s5884_s11 + $0x58] sm:$0xff] %v3157_v37 }
 0x349   : > { %3249 = vst [vmem:[%s5884_s11 + $0x48] sm:$0xff] %v3149_v17 }
 0x34b   : > { %v4182_v49 = vpop.f32.mrb[44].mxu1 }
 0x34c   : > { %v3170_v35 = vadd.f32 %v4182_v49, %v5878_v16  ;;  %v3161_v1 = vpop.f32.mrb[45].mxu1 }
 0x34d   : > { %v3162_v36 = vadd.f32 %v5878_v16, %v3161_v1  ;;  %v4183_v56 = vpop.f32.mrb[46].mxu1 }
 0x34e   : > { %3254 = vst [vmem:[%s5884_s11 + $0x70] sm:$0xff] %v3170_v35  ;;  %v3173_v44 = vadd.f32 %v4183_v56, %v5878_v16  ;;  %v3164_v62 = vpop.f32.mrb[47].mxu1 }
 0x34f   : > { %3252 = vst [vmem:[%s5884_s11 + $0x60] sm:$0xff] %v3162_v36  ;;  %v3165_v23 = vadd.f32 %v5878_v16, %v3164_v62 }
 0x350   : > { %3255 = vst [vmem:[%s5884_s11 + $0x78] sm:$0xff] %v3173_v44 }
 0x351   : > { %3253 = vst [vmem:[%s5884_s11 + $0x68] sm:$0xff] %v3165_v23 }
 0x353   : > { %v4186_v34 = vpop.f32.mrb[48].mxu1 }
 0x354   : > { %v3186_v28 = vadd.f32 %v4186_v34, %v5878_v16  ;;  %v3177_v43 = vpop.f32.mrb[49].mxu1 }
 0x355   : > { %v3178_v29 = vadd.f32 %v5878_v16, %v3177_v43  ;;  %v4187_v15 = vpop.f32.mrb[50].mxu1 }
 0x356   : > { %3258 = vst [vmem:[%s5884_s11 + $0x90] sm:$0xff] %v3186_v28  ;;  %v3189_v12 = vadd.f32 %v4187_v15, %v5878_v16  ;;  %v3180_v5 = vpop.f32.mrb[51].mxu1 }
 0x357   : > { %3256 = vst [vmem:[%s5884_s11 + $0x80] sm:$0xff] %v3178_v29  ;;  %v3181_v3 = vadd.f32 %v5878_v16, %v3180_v5 }
 0x358   : > { %3259 = vst [vmem:[%s5884_s11 + $0x98] sm:$0xff] %v3189_v12 }
 0x359   : > { %3257 = vst [vmem:[%s5884_s11 + $0x88] sm:$0xff] %v3181_v3 }
 0x35b   : > { %v4190_v20 = vpop.f32.mrb[52].mxu1 }
 0x35c   : > { %v3202_v47 = vadd.f32 %v4190_v20, %v5878_v16  ;;  %v3193_v22 = vpop.f32.mrb[53].mxu1 }
 0x35d   : > { %v3194_v48 = vadd.f32 %v5878_v16, %v3193_v22  ;;  %v4191_v6 = vpop.f32.mrb[54].mxu1 }
 0x35e   : > { %3262 = vst [vmem:[%s5884_s11 + $0xb0] sm:$0xff] %v3202_v47  ;;  %v3205_v7 = vadd.f32 %v4191_v6, %v5878_v16  ;;  %v3196_v63 = vpop.f32.mrb[55].mxu1 }
 0x35f   : > { %3260 = vst [vmem:[%s5884_s11 + $0xa0] sm:$0xff] %v3194_v48  ;;  %v3197_v25 = vadd.f32 %v5878_v16, %v3196_v63 }
 0x360   : > { %3263 = vst [vmem:[%s5884_s11 + $0xb8] sm:$0xff] %v3205_v7 }
 0x361   : > { %3261 = vst [vmem:[%s5884_s11 + $0xa8] sm:$0xff] %v3197_v25 }
 0x363   : > { %v4194_v59 = vpop.f32.mrb[56].mxu1 }
 0x364   : > { %v3218_v30 = vadd.f32 %v4194_v59, %v5878_v16  ;;  %v3209_v33 = vpop.f32.mrb[57].mxu1 }
 0x365   : > { %v3210_v54 = vadd.f32 %v5878_v16, %v3209_v33  ;;  %v4195_v10 = vpop.f32.mrb[58].mxu1 }
 0x366   : > { %3266 = vst [vmem:[%s5884_s11 + $0xd0] sm:$0xff] %v3218_v30  ;;  %v3221_v38 = vadd.f32 %v4195_v10, %v5878_v16  ;;  %v3212_v61 = vpop.f32.mrb[59].mxu1 }
 0x367   : > { %3264 = vst [vmem:[%s5884_s11 + $0xc0] sm:$0xff] %v3210_v54  ;;  %v3213_v58 = vadd.f32 %v5878_v16, %v3212_v61 }
 0x368   : > { %3267 = vst [vmem:[%s5884_s11 + $0xd8] sm:$0xff] %v3221_v38 }
 0x369   : > { %3265 = vst [vmem:[%s5884_s11 + $0xc8] sm:$0xff] %v3213_v58 }
 0x36b   : > { %v4198_v2 = vpop.f32.mrb[60].mxu1 }
 0x36c   : > { %v3234_v31 = vadd.f32 %v4198_v2, %v5878_v16  ;;  %v3225_v57 = vpop.f32.mrb[61].mxu1 }
 0x36d   : > { %v3226_v60 = vadd.f32 %v5878_v16, %v3225_v57  ;;  %v4199_v55 = vpop.f32.mrb[62].mxu1 }
 0x36e   : > { %3270 = vst [vmem:[%s5884_s11 + $0xf0] sm:$0xff] %v3234_v31  ;;  %v3237_v19 = vadd.f32 %v4199_v55, %v5878_v16  ;;  %v3228_v27 = vpop.f32.mrb[63].mxu1 }
 0x36f   : > { %3268 = vst [vmem:[%s5884_s11 + $0xe0] sm:$0xff] %v3226_v60  ;;  %v3229_v40 = vadd.f32 %v5878_v16, %v3228_v27 }
 0x370   : > { %3271 = vst [vmem:[%s5884_s11 + $0xf8] sm:$0xff] %v3237_v19 }
 0x371   : > { %3269 = vst [vmem:[%s5884_s11 + $0xe8] sm:$0xff] %v3229_v40 }
 0x372   : > { %4673 = shalt.err (!%p4670_p2)
}
 0x373   : > { %s4674_s6 = scalar_lea.hbm %s5949_s9, 4096  ;;  %s4678_s8 = scalar_lea.hbm %s6004_s5, 8192 }
 0x374   : > { %p4675_p13 = scmp.ne.s32.totalorder %s5949_s9, %s4674_s6  ;;  %p4679_p4 = scmp.lt.u32.totalorder %s5949_s9, %s6004_s5 }
 0x375   : > { %p4680_p5 = scmp.lt.u32.totalorder %s4678_s8, %s4674_s6  ;;  %p4682_p11 = scmp.lt.u32.totalorder %s4674_s6, %s5949_s9 }
 0x376   : > { %p4676_p6 = pnand %p4675_p13, %p6089_p0 }
 0x377   : > { %p4681_p8 = por %p4680_p5, %p4679_p4 }
 0x378   : > { %p4677_p10 = pneg %p4676_p6 }
 0x379   : > { %p4683_p1 = por %p4682_p11, %p4681_p8 }
 0x37b   : > { %p4684_p3 = pnand %p4683_p1, %p4677_p10 }
 0x37d   : > { %4687 = shalt.err (!%p4684_p3)
}
 0x37e   : > { %s4741_s28 = smov 128   ;;  %s4742_s15 = smov 8  }
 0x37f   : > { %4466 = dma.vmem_to_hbm [thread:$0]  (%p6089_p0), %s5951_s30, 4096, %s5949_s9, %s3273_s22, %s4741_s28, %s4741_s28, %s4742_s15  }
 0x380 PF: > { %s3301_s16 = sand.u32 1, %s4718_s18   ;;  %p6090_p7 = scmp.ne.s32.totalorder %s6031_s25, 0 }
 0x381   : > { %p6091_p9 = scmp.ge.s32.totalorder %s4730_s21, 2  ;;  %s3302_s12 = scalar_lea.sflag [#allocation4], %s3301_s16 }
 0x383   : > { %p4480_p12 = pnand %p6091_p9, %p6090_p7 }
 0x385   : > { %4713 = dma.done.wait (!%p4480_p12), %s3302_s12, 4096  }
 0x386   : > { %4715 = vsyncadd (!%p4480_p12), %s3302_s12, 4294963200  ;;  %p19_p2 = scmp.ge.s32.totalorder %s4883_s14, 4   ;;  %s6092_s18 = smov %s4722_s19 }
 0x387   : > { %s6093_s19 = smov %s4726_s20  ;;  %s6094_s20 = smov %s4899_s27 }
 0x388   : > { %s6095_s21 = smov %s4883_s14  ;;  %21 = sbr.rel (!%p19_p2) target bundleno = 6 (0x6), region = 101 }
 0x38f   :  { %3307 = vsyncpa [#allocation3], 1 }
 0x390   :  { %3309 = vsyncpa [#allocation3 + $0x1], 1 }
 0x391   :  { %3310 = vsyncpa [#allocation6], 1 }
 0x392   :  { %3311 = vsyncpa [#allocation4], 1 }
 0x393   :  { %3313 = vsyncpa [#allocation4 + $0x1], 1 }

</bundles_post_ra>
